<compile_context>
chip_gen: v6e
topology: v6e:2x2x1
jax: 0.10.0
libtpu: 0.0.40
codegen_flags: <defaults>
</compile_context>

<pallas_src>
import math

import jax
import jax.numpy as jnp
from jax.experimental import pallas as pl
from jax.experimental.pallas import tpu as pltpu

# ---- small synthetic BERT config (consistent with the module's forward) ----
B, S, H = 2, 8, 32            # batch, sequence, hidden ("embedding_size")
NUM_HEADS = 4
HEAD_DIM = H // NUM_HEADS
INTERMEDIATE = 64
NUM_LAYERS = 2
VOCAB = 100
MAX_POS = 16
LN_EPS = 1e-12

# ---- packed small-parameter slab layout: rows of a (SMALL_ROWS, 128) slab ----
ROW_GAMMA_EMB = 0             # embedding LayerNorm gamma     lanes [0:H]
ROW_BETA_EMB = 1              # embedding LayerNorm beta      lanes [0:H]
ROW_CENTER = 2                # VHM center                    lanes [0:H]
LAYER_ROW0 = 3
PER_LAYER_ROWS = 8            # [bqkv(3H), b1(I), bo, g1, be1, b2, g2, be2]
_ROWS_NEEDED = LAYER_ROW0 + NUM_LAYERS * PER_LAYER_ROWS
SMALL_ROWS = ((_ROWS_NEEDED + 7) // 8) * 8


# --------------------------- in-kernel helpers ------------------------------
def _layer_norm(x, gamma, beta):
    mu = jnp.mean(x, axis=-1, keepdims=True)
    var = jnp.mean((x - mu) ** 2, axis=-1, keepdims=True)
    inv = jax.lax.rsqrt(var + LN_EPS)
    return (x - mu) * inv * gamma + beta


def _gelu(x):
    # TODO(synk): HF BERT uses erf-GELU; tanh-approx kept (difference ~1e-3/layer).
    c = math.sqrt(2.0 / math.pi)
    return 0.5 * x * (1.0 + jnp.tanh(c * (x + 0.044715 * x * x * x)))


# ------------------------------ fused kernel ---------------------------------
def logbert_fused_kernel(x_ref, mask_ref, small_ref,
                         wqkv_ref, wo_ref, w1_ref, w2_ref,
                         out_ref):
    """One grid program = one batch element: full encoder + CLS + VHM distance."""
    scale = 1.0 / math.sqrt(HEAD_DIM)

    # Small params (hoisted once; everything below is f32 elementwise math).
    gamma_e = small_ref[ROW_GAMMA_EMB:ROW_GAMMA_EMB + 1, 0:H]
    beta_e = small_ref[ROW_BETA_EMB:ROW_BETA_EMB + 1, 0:H]
    center = small_ref[ROW_CENTER:ROW_CENTER + 1, 0:H]
    am = mask_ref[...]                                   # (1, 1, S) additive mask

    # Embedding LayerNorm on this batch element's (S, H) block.
    x = _layer_norm(x_ref[0], gamma_e, beta_e)           # (S, H) f32

    for l in range(NUM_LAYERS):                          # static unroll, weights resident
        r = LAYER_ROW0 + l * PER_LAYER_ROWS
        bqkv = small_ref[r + 0:r + 1, 0:3 * H]           # (1, 3H)
        b1 = small_ref[r + 1:r + 2, 0:INTERMEDIATE]      # (1, I)
        bo = small_ref[r + 2:r + 3, 0:H]
        g1 = small_ref[r + 3:r + 4, 0:H]
        be1 = small_ref[r + 4:r + 5, 0:H]
        b2 = small_ref[r + 5:r + 6, 0:H]
        g2 = small_ref[r + 6:r + 7, 0:H]
        be2 = small_ref[r + 7:r + 8, 0:H]

        # Fused QKV projection: bf16 operands -> MXU, f32 accumulate.
        qkv = jnp.dot(x.astype(jnp.bfloat16), wqkv_ref[l],
                      preferred_element_type=jnp.float32) + bqkv        # (S, 3H)

        # Head split -> (NUM_HEADS, S, HEAD_DIM); attention as TWO head-batched
        # contractions per layer (K transpose folded into dot_general).
        q = jnp.stack([qkv[:, h * HEAD_DIM:(h + 1) * HEAD_DIM]
                       for h in range(NUM_HEADS)], axis=0)
        k = jnp.stack([qkv[:, H + h * HEAD_DIM:H + (h + 1) * HEAD_DIM]
                       for h in range(NUM_HEADS)], axis=0)
        v = jnp.stack([qkv[:, 2 * H + h * HEAD_DIM:2 * H + (h + 1) * HEAD_DIM]
                       for h in range(NUM_HEADS)], axis=0)

        sc = jnp.einsum('hqd,hkd->hqk', q, k,
                        preferred_element_type=jnp.float32) * scale + am  # (NH,S,S)
        m = jnp.max(sc, axis=-1, keepdims=True)
        e = jnp.exp(sc - m)
        p = e / jnp.sum(e, axis=-1, keepdims=True)        # exact softmax (f32)
        ctx = jnp.einsum('hqk,hkd->hqd', p, v,
                         preferred_element_type=jnp.float32)              # (NH,S,HD)
        ctx = jnp.concatenate([ctx[h] for h in range(NUM_HEADS)], axis=-1)  # (S, H)

        attn = jnp.dot(ctx.astype(jnp.bfloat16), wo_ref[l],
                       preferred_element_type=jnp.float32) + bo
        h1 = _layer_norm(x + attn, g1, be1)
        ff = jnp.dot(h1.astype(jnp.bfloat16), w1_ref[l],
                     preferred_element_type=jnp.float32) + b1
        ff = _gelu(ff)
        ff = jnp.dot(ff.astype(jnp.bfloat16), w2_ref[l],
                     preferred_element_type=jnp.float32) + b2
        x = _layer_norm(h1 + ff, g2, be2)

    # CLS = row 0 of this program's block (direct slice, no gather/concatenate).
    cls = x[0:1, :]                                       # (1, H)
    d = cls - center
    sq = jnp.sum(d * d, axis=-1, keepdims=True)           # (1, 1) per-sample ||.||^2

    out_ref[...] = jnp.zeros_like(out_ref)                # deterministic padding
    out_ref[0:1, 0:1, 0:H] = cls.reshape(1, 1, H)
    out_ref[0:1, 0:1, H:H + 1] = sq.reshape(1, 1, 1)


# ------------------------------- wrapper -------------------------------------
@jax.jit
def logbert_vhm_forward(input_ids, attention_mask, params):
    # Embedding gather + sum is glue, kept in plain JAX.
    emb = (params['word_emb'][input_ids]
           + params['pos_emb'][:S][None, :, :]
           + params['type_emb'][0][None, None, :]).astype(jnp.float32)   # (B, S, H)
    # Additive attention mask (1 - m) * -1e4, shaped for head-batched broadcast.
    add_mask = ((1.0 - attention_mask.astype(jnp.float32)) * -10000.0
                ).reshape(B, 1, S)

    out = pl.pallas_call(
        logbert_fused_kernel,
        out_shape=jax.ShapeDtypeStruct((B, 1, 128), jnp.float32),
        grid=(B,),
        in_specs=[
            pl.BlockSpec((1, S, H), lambda b: (b, 0, 0)),               # per-batch activations
            pl.BlockSpec((1, 1, S), lambda b: (b, 0, 0)),               # per-batch additive mask
            pl.BlockSpec((SMALL_ROWS, 128), lambda b: (0, 0)),          # packed small params (resident)
            pl.BlockSpec((NUM_LAYERS, H, 3 * H), lambda b: (0, 0, 0)),  # fused QKV weights (resident)
            pl.BlockSpec((NUM_LAYERS, H, H), lambda b: (0, 0, 0)),      # attn output proj
            pl.BlockSpec((NUM_LAYERS, H, INTERMEDIATE), lambda b: (0, 0, 0)),
            pl.BlockSpec((NUM_LAYERS, INTERMEDIATE, H), lambda b: (0, 0, 0)),
        ],
        out_specs=pl.BlockSpec((1, 1, 128), lambda b: (b, 0, 0)),       # lane-dense output slab
        compiler_params=pltpu.CompilerParams(
            dimension_semantics=("parallel",)),   # both TCs on v7x; no-op on v5e/v6e
    )(emb, add_mask, params['small'],
      params['wqkv'], params['wo'], params['w1'], params['w2'])

    cls = out[:, 0, :H]                       # (B, H)
    loss = jnp.mean(out[:, 0, H])             # mean_b ||cls_b - center||^2
    return cls, loss


# --------------------------- deterministic params ----------------------------
def init_params(key):
    def nrm(k, shape, scale=0.02):
        return scale * jax.random.normal(k, shape, dtype=jnp.float32)

    keys = jax.random.split(key, 4 + NUM_LAYERS)
    wqkv, wo, w1, w2 = [], [], [], []
    for li in range(NUM_LAYERS):
        lk = jax.random.split(keys[4 + li], 6)
        wq = nrm(lk[0], (H, H)); wk = nrm(lk[1], (H, H)); wv = nrm(lk[2], (H, H))
        wqkv.append(jnp.concatenate([wq, wk, wv], axis=1))         # fused (H, 3H)
        wo.append(nrm(lk[3], (H, H)))
        w1.append(nrm(lk[4], (H, INTERMEDIATE)))
        w2.append(nrm(lk[5], (INTERMEDIATE, H)))

    center = jax.random.normal(keys[3], (H,), dtype=jnp.float32)
    one = jnp.ones((H,), jnp.float32)
    zero = jnp.zeros((H,), jnp.float32)

    def row(v):                                # pad a vector to one (1, 128) slab row
        return jnp.pad(v, (0, 128 - v.shape[0])).reshape(1, 128)

    rows = [row(one), row(zero), row(center)]  # emb-LN gamma/beta, VHM center
    for _ in range(NUM_LAYERS):
        rows += [row(jnp.zeros((3 * H,), jnp.float32)),            # bqkv
                 row(jnp.zeros((INTERMEDIATE,), jnp.float32)),     # b1
                 row(zero),                                        # bo
                 row(one), row(zero),                              # g1, be1
                 row(zero),                                        # b2
                 row(one), row(zero)]                              # g2, be2
    while len(rows) < SMALL_ROWS:
        rows.append(jnp.zeros((1, 128), jnp.float32))
    small = jnp.concatenate(rows, axis=0)                          # (SMALL_ROWS, 128)

    # TODO(synk): BertModel.from_pretrained checkpoint/tokenizer load has no
    # Pallas equivalent; synthetic deterministic weights are used instead.
    return {
        'word_emb': nrm(keys[0], (VOCAB, H)),
        'pos_emb':  nrm(keys[1], (MAX_POS, H)),
        'type_emb': nrm(keys[2], (2, H)),
        'small':    small,
        # Weight matrices stored bf16 (MXU operands); elementwise math stays f32.
        'wqkv': jnp.stack(wqkv).astype(jnp.bfloat16),              # (L, H, 3H)
        'wo':   jnp.stack(wo).astype(jnp.bfloat16),                # (L, H, H)
        'w1':   jnp.stack(w1).astype(jnp.bfloat16),                # (L, H, I)
        'w2':   jnp.stack(w2).astype(jnp.bfloat16),                # (L, I, H)
    }


# ------------------------------------ main -----------------------------------
if __name__ == "__main__":
    root = jax.random.PRNGKey(0)
    k_params, k_ids = jax.random.split(root)
    params = init_params(k_params)

    input_ids = jax.random.randint(k_ids, (B, S), 0, VOCAB, dtype=jnp.int32)
    attention_mask = jnp.ones((B, S), dtype=jnp.int32)

    cls, loss = logbert_vhm_forward(input_ids, attention_mask, params)
    cls, loss = jax.block_until_ready((cls, loss))
    assert cls.shape == (B, H)
    assert loss.shape == ()
    print("KERNEL_OK")
</pallas_src>

<mosaic_0001>
module attributes {stable_mosaic.version = 11 : i64} {
  func.func @logbert_fused_kernel(%arg0: i32, %arg1: memref<1x8x32xf32, #tpu.memory_space<vmem>>, %arg2: memref<1x1x8xf32, #tpu.memory_space<vmem>>, %arg3: memref<24x128xf32, #tpu.memory_space<vmem>>, %arg4: memref<2x32x96xbf16, #tpu.memory_space<vmem>>, %arg5: memref<2x32x32xbf16, #tpu.memory_space<vmem>>, %arg6: memref<2x32x64xbf16, #tpu.memory_space<vmem>>, %arg7: memref<2x64x32xbf16, #tpu.memory_space<vmem>>, %arg8: memref<1x1x128xf32, #tpu.memory_space<vmem>>) attributes {dimension_semantics = [#tpu.dimension_semantics<parallel>], iteration_bounds = array<i64: 2>, scalar_prefetch = 0 : i64, scratch_operands = 0 : i64, tpu.core_type = #tpu.core_type<tc>, window_params = [{transform_indices = @transform_0, window_bounds = array<i64: 1, 8, 32>}, {transform_indices = @transform_1, window_bounds = array<i64: 1, 1, 8>}, {pipeline_mode = #tpu.pipeline_mode<synchronous>, transform_indices = @transform_2, window_bounds = array<i64: 24, 128>}, {pipeline_mode = #tpu.pipeline_mode<synchronous>, transform_indices = @transform_3, window_bounds = array<i64: 2, 32, 96>}, {pipeline_mode = #tpu.pipeline_mode<synchronous>, transform_indices = @transform_4, window_bounds = array<i64: 2, 32, 32>}, {pipeline_mode = #tpu.pipeline_mode<synchronous>, transform_indices = @transform_5, window_bounds = array<i64: 2, 32, 64>}, {pipeline_mode = #tpu.pipeline_mode<synchronous>, transform_indices = @transform_6, window_bounds = array<i64: 2, 64, 32>}, {transform_indices = @transform_7, window_bounds = array<i64: 1, 1, 128>}]} {
    %c0 = arith.constant 0 : index
    %c0_0 = arith.constant 0 : index
    %0 = vector.load %arg3[%c0, %c0_0] : memref<24x128xf32, #tpu.memory_space<vmem>>, vector<1x32xf32>
    %c1 = arith.constant 1 : index
    %c0_1 = arith.constant 0 : index
    %1 = vector.load %arg3[%c1, %c0_1] : memref<24x128xf32, #tpu.memory_space<vmem>>, vector<1x32xf32>
    %c2 = arith.constant 2 : index
    %c0_2 = arith.constant 0 : index
    %2 = vector.load %arg3[%c2, %c0_2] : memref<24x128xf32, #tpu.memory_space<vmem>>, vector<1x32xf32>
    %c0_3 = arith.constant 0 : index
    %c0_4 = arith.constant 0 : index
    %c0_5 = arith.constant 0 : index
    %3 = vector.load %arg2[%c0_3, %c0_4, %c0_5] : memref<1x1x8xf32, #tpu.memory_space<vmem>>, vector<1x1x8xf32>
    %c0_6 = arith.constant 0 : index
    %c0_7 = arith.constant 0 : index
    %c0_8 = arith.constant 0 : index
    %4 = vector.load %arg1[%c0_6, %c0_7, %c0_8] : memref<1x8x32xf32, #tpu.memory_space<vmem>>, vector<1x8x32xf32>
    %5 = vector.shape_cast %4 : vector<1x8x32xf32> to vector<8x32xf32>
    %cst = arith.constant dense<0.000000e+00> : vector<8xf32>
    %6 = vector.multi_reduction <add>, %5, %cst [1] : vector<8x32xf32> to vector<8xf32>
    %7 = vector.shape_cast %6 : vector<8xf32> to vector<8x1xf32>
    %cst_9 = arith.constant 3.200000e+01 : f32
    %8 = vector.broadcast %cst_9 : f32 to vector<8x1xf32>
    %9 = arith.divf %7, %8 : vector<8x1xf32>
    %10 = vector.broadcast %9 : vector<8x1xf32> to vector<8x32xf32>
    %11 = arith.subf %5, %10 : vector<8x32xf32>
    %12 = arith.mulf %11, %11 : vector<8x32xf32>
    %cst_10 = arith.constant dense<0.000000e+00> : vector<8xf32>
    %13 = vector.multi_reduction <add>, %12, %cst_10 [1] : vector<8x32xf32> to vector<8xf32>
    %14 = vector.shape_cast %13 : vector<8xf32> to vector<8x1xf32>
    %cst_11 = arith.constant 3.200000e+01 : f32
    %15 = vector.broadcast %cst_11 : f32 to vector<8x1xf32>
    %16 = arith.divf %14, %15 : vector<8x1xf32>
    %cst_12 = arith.constant 9.99999996E-13 : f32
    %17 = vector.broadcast %cst_12 : f32 to vector<8x1xf32>
    %18 = arith.addf %16, %17 : vector<8x1xf32>
    %19 = math.rsqrt %18 : vector<8x1xf32>
    %20 = vector.broadcast %9 : vector<8x1xf32> to vector<8x32xf32>
    %21 = arith.subf %5, %20 : vector<8x32xf32>
    %22 = vector.broadcast %19 : vector<8x1xf32> to vector<8x32xf32>
    %23 = arith.mulf %21, %22 : vector<8x32xf32>
    %24 = vector.broadcast %0 : vector<1x32xf32> to vector<8x32xf32>
    %25 = arith.mulf %23, %24 : vector<8x32xf32>
    %26 = vector.broadcast %1 : vector<1x32xf32> to vector<8x32xf32>
    %27 = arith.addf %25, %26 : vector<8x32xf32>
    %c3 = arith.constant 3 : index
    %c0_13 = arith.constant 0 : index
    %28 = vector.load %arg3[%c3, %c0_13] : memref<24x128xf32, #tpu.memory_space<vmem>>, vector<1x96xf32>
    %c4 = arith.constant 4 : index
    %c0_14 = arith.constant 0 : index
    %29 = vector.load %arg3[%c4, %c0_14] : memref<24x128xf32, #tpu.memory_space<vmem>>, vector<1x64xf32>
    %c5 = arith.constant 5 : index
    %c0_15 = arith.constant 0 : index
    %30 = vector.load %arg3[%c5, %c0_15] : memref<24x128xf32, #tpu.memory_space<vmem>>, vector<1x32xf32>
    %c6 = arith.constant 6 : index
    %c0_16 = arith.constant 0 : index
    %31 = vector.load %arg3[%c6, %c0_16] : memref<24x128xf32, #tpu.memory_space<vmem>>, vector<1x32xf32>
    %c7 = arith.constant 7 : index
    %c0_17 = arith.constant 0 : index
    %32 = vector.load %arg3[%c7, %c0_17] : memref<24x128xf32, #tpu.memory_space<vmem>>, vector<1x32xf32>
    %c8 = arith.constant 8 : index
    %c0_18 = arith.constant 0 : index
    %33 = vector.load %arg3[%c8, %c0_18] : memref<24x128xf32, #tpu.memory_space<vmem>>, vector<1x32xf32>
    %c9 = arith.constant 9 : index
    %c0_19 = arith.constant 0 : index
    %34 = vector.load %arg3[%c9, %c0_19] : memref<24x128xf32, #tpu.memory_space<vmem>>, vector<1x32xf32>
    %c10 = arith.constant 10 : index
    %c0_20 = arith.constant 0 : index
    %35 = vector.load %arg3[%c10, %c0_20] : memref<24x128xf32, #tpu.memory_space<vmem>>, vector<1x32xf32>
    %36 = arith.truncf %27 : vector<8x32xf32> to vector<8x32xbf16>
    %c0_21 = arith.constant 0 : index
    %c0_22 = arith.constant 0 : index
    %c0_23 = arith.constant 0 : index
    %37 = vector.load %arg4[%c0_21, %c0_22, %c0_23] : memref<2x32x96xbf16, #tpu.memory_space<vmem>>, vector<1x32x96xbf16>
    %38 = vector.shape_cast %37 : vector<1x32x96xbf16> to vector<32x96xbf16>
    %cst_24 = arith.constant dense<0.000000e+00> : vector<8x96xf32>
    %39 = tpu.matmul %36, %38, %cst_24 {dimension_numbers = #tpu.dot_dimension_numbers<[1], [0], [0], [1], [0, 0, 1, 1], [], []>} : vector<8x32xbf16>, vector<32x96xbf16>, vector<8x96xf32> -> vector<8x96xf32>
    %40 = vector.broadcast %28 : vector<1x96xf32> to vector<8x96xf32>
    %41 = arith.addf %39, %40 : vector<8x96xf32>
    %42 = vector.extract_strided_slice %41 {offsets = [0, 0], sizes = [8, 8], strides = [1, 1]} : vector<8x96xf32> to vector<8x8xf32>
    %43 = vector.extract_strided_slice %41 {offsets = [0, 8], sizes = [8, 8], strides = [1, 1]} : vector<8x96xf32> to vector<8x8xf32>
    %44 = vector.extract_strided_slice %41 {offsets = [0, 16], sizes = [8, 8], strides = [1, 1]} : vector<8x96xf32> to vector<8x8xf32>
    %45 = vector.extract_strided_slice %41 {offsets = [0, 24], sizes = [8, 8], strides = [1, 1]} : vector<8x96xf32> to vector<8x8xf32>
    %46 = vector.shape_cast %42 : vector<8x8xf32> to vector<1x8x8xf32>
    %47 = vector.shape_cast %43 : vector<8x8xf32> to vector<1x8x8xf32>
    %48 = vector.shape_cast %44 : vector<8x8xf32> to vector<1x8x8xf32>
    %49 = vector.shape_cast %45 : vector<8x8xf32> to vector<1x8x8xf32>
    %50 = tpu.concatenate %46, %47, %48, %49 in 0 : vector<1x8x8xf32>, vector<1x8x8xf32>, vector<1x8x8xf32>, vector<1x8x8xf32> -> vector<4x8x8xf32>
    %51 = vector.extract_strided_slice %41 {offsets = [0, 32], sizes = [8, 8], strides = [1, 1]} : vector<8x96xf32> to vector<8x8xf32>
    %52 = vector.extract_strided_slice %41 {offsets = [0, 40], sizes = [8, 8], strides = [1, 1]} : vector<8x96xf32> to vector<8x8xf32>
    %53 = vector.extract_strided_slice %41 {offsets = [0, 48], sizes = [8, 8], strides = [1, 1]} : vector<8x96xf32> to vector<8x8xf32>
    %54 = vector.extract_strided_slice %41 {offsets = [0, 56], sizes = [8, 8], strides = [1, 1]} : vector<8x96xf32> to vector<8x8xf32>
    %55 = vector.shape_cast %51 : vector<8x8xf32> to vector<1x8x8xf32>
    %56 = vector.shape_cast %52 : vector<8x8xf32> to vector<1x8x8xf32>
    %57 = vector.shape_cast %53 : vector<8x8xf32> to vector<1x8x8xf32>
    %58 = vector.shape_cast %54 : vector<8x8xf32> to vector<1x8x8xf32>
    %59 = tpu.concatenate %55, %56, %57, %58 in 0 : vector<1x8x8xf32>, vector<1x8x8xf32>, vector<1x8x8xf32>, vector<1x8x8xf32> -> vector<4x8x8xf32>
    %60 = vector.extract_strided_slice %41 {offsets = [0, 64], sizes = [8, 8], strides = [1, 1]} : vector<8x96xf32> to vector<8x8xf32>
    %61 = vector.extract_strided_slice %41 {offsets = [0, 72], sizes = [8, 8], strides = [1, 1]} : vector<8x96xf32> to vector<8x8xf32>
    %62 = vector.extract_strided_slice %41 {offsets = [0, 80], sizes = [8, 8], strides = [1, 1]} : vector<8x96xf32> to vector<8x8xf32>
    %63 = vector.extract_strided_slice %41 {offsets = [0, 88], sizes = [8, 8], strides = [1, 1]} : vector<8x96xf32> to vector<8x8xf32>
    %64 = vector.shape_cast %60 : vector<8x8xf32> to vector<1x8x8xf32>
    %65 = vector.shape_cast %61 : vector<8x8xf32> to vector<1x8x8xf32>
    %66 = vector.shape_cast %62 : vector<8x8xf32> to vector<1x8x8xf32>
    %67 = vector.shape_cast %63 : vector<8x8xf32> to vector<1x8x8xf32>
    %68 = tpu.concatenate %64, %65, %66, %67 in 0 : vector<1x8x8xf32>, vector<1x8x8xf32>, vector<1x8x8xf32>, vector<1x8x8xf32> -> vector<4x8x8xf32>
    "tpu.trace_start"() <{level = 10 : i32, message = "hqd,hkd->hqk"}> : () -> ()
    %cst_25 = arith.constant dense<0.000000e+00> : vector<4x8x8xf32>
    %69 = tpu.matmul %50, %59, %cst_25 {dimension_numbers = #tpu.dot_dimension_numbers<[2], [2], [1], [1], [0, 0, 0, 1, 1, 1], [0], [0]>} : vector<4x8x8xf32>, vector<4x8x8xf32>, vector<4x8x8xf32> -> vector<4x8x8xf32>
    "tpu.trace_stop"() : () -> ()
    %cst_26 = arith.constant 0.353553385 : f32
    %70 = vector.broadcast %cst_26 : f32 to vector<4x8x8xf32>
    %71 = arith.mulf %69, %70 : vector<4x8x8xf32>
    %72 = vector.broadcast %3 : vector<1x1x8xf32> to vector<4x8x8xf32>
    %73 = arith.addf %71, %72 : vector<4x8x8xf32>
    %cst_27 = arith.constant dense<0xFF800000> : vector<4x8xf32>
    %74 = vector.multi_reduction <maximumf>, %73, %cst_27 [2] : vector<4x8x8xf32> to vector<4x8xf32>
    %75 = vector.shape_cast %74 : vector<4x8xf32> to vector<4x8x1xf32>
    %76 = vector.broadcast %75 : vector<4x8x1xf32> to vector<4x8x8xf32>
    %77 = arith.subf %73, %76 : vector<4x8x8xf32>
    %78 = math.exp %77 : vector<4x8x8xf32>
    %cst_28 = arith.constant dense<0.000000e+00> : vector<4x8xf32>
    %79 = vector.multi_reduction <add>, %78, %cst_28 [2] : vector<4x8x8xf32> to vector<4x8xf32>
    %80 = vector.shape_cast %79 : vector<4x8xf32> to vector<4x8x1xf32>
    %81 = vector.broadcast %80 : vector<4x8x1xf32> to vector<4x8x8xf32>
    %82 = arith.divf %78, %81 : vector<4x8x8xf32>
    "tpu.trace_start"() <{level = 10 : i32, message = "hqk,hkd->hqd"}> : () -> ()
    %cst_29 = arith.constant dense<0.000000e+00> : vector<4x8x8xf32>
    %83 = tpu.matmul %82, %68, %cst_29 {dimension_numbers = #tpu.dot_dimension_numbers<[2], [1], [1], [2], [0, 0, 0, 1, 1, 2], [0], [0]>} : vector<4x8x8xf32>, vector<4x8x8xf32>, vector<4x8x8xf32> -> vector<4x8x8xf32>
    "tpu.trace_stop"() : () -> ()
    %84 = vector.extract_strided_slice %83 {offsets = [0, 0, 0], sizes = [1, 8, 8], strides = [1, 1, 1]} : vector<4x8x8xf32> to vector<1x8x8xf32>
    %85 = vector.shape_cast %84 : vector<1x8x8xf32> to vector<8x8xf32>
    %86 = vector.extract_strided_slice %83 {offsets = [1, 0, 0], sizes = [1, 8, 8], strides = [1, 1, 1]} : vector<4x8x8xf32> to vector<1x8x8xf32>
    %87 = vector.shape_cast %86 : vector<1x8x8xf32> to vector<8x8xf32>
    %88 = vector.extract_strided_slice %83 {offsets = [2, 0, 0], sizes = [1, 8, 8], strides = [1, 1, 1]} : vector<4x8x8xf32> to vector<1x8x8xf32>
    %89 = vector.shape_cast %88 : vector<1x8x8xf32> to vector<8x8xf32>
    %90 = vector.extract_strided_slice %83 {offsets = [3, 0, 0], sizes = [1, 8, 8], strides = [1, 1, 1]} : vector<4x8x8xf32> to vector<1x8x8xf32>
    %91 = vector.shape_cast %90 : vector<1x8x8xf32> to vector<8x8xf32>
    %92 = tpu.concatenate %85, %87, %89, %91 in 1 : vector<8x8xf32>, vector<8x8xf32>, vector<8x8xf32>, vector<8x8xf32> -> vector<8x32xf32>
    %93 = arith.truncf %92 : vector<8x32xf32> to vector<8x32xbf16>
    %c0_30 = arith.constant 0 : index
    %c0_31 = arith.constant 0 : index
    %c0_32 = arith.constant 0 : index
    %94 = vector.load %arg5[%c0_30, %c0_31, %c0_32] : memref<2x32x32xbf16, #tpu.memory_space<vmem>>, vector<1x32x32xbf16>
    %95 = vector.shape_cast %94 : vector<1x32x32xbf16> to vector<32x32xbf16>
    %cst_33 = arith.constant dense<0.000000e+00> : vector<8x32xf32>
    %96 = tpu.matmul %93, %95, %cst_33 {dimension_numbers = #tpu.dot_dimension_numbers<[1], [0], [0], [1], [0, 0, 1, 1], [], []>} : vector<8x32xbf16>, vector<32x32xbf16>, vector<8x32xf32> -> vector<8x32xf32>
    %97 = vector.broadcast %30 : vector<1x32xf32> to vector<8x32xf32>
    %98 = arith.addf %96, %97 : vector<8x32xf32>
    %99 = arith.addf %27, %98 : vector<8x32xf32>
    %cst_34 = arith.constant dense<0.000000e+00> : vector<8xf32>
    %100 = vector.multi_reduction <add>, %99, %cst_34 [1] : vector<8x32xf32> to vector<8xf32>
    %101 = vector.shape_cast %100 : vector<8xf32> to vector<8x1xf32>
    %cst_35 = arith.constant 3.200000e+01 : f32
    %102 = vector.broadcast %cst_35 : f32 to vector<8x1xf32>
    %103 = arith.divf %101, %102 : vector<8x1xf32>
    %104 = vector.broadcast %103 : vector<8x1xf32> to vector<8x32xf32>
    %105 = arith.subf %99, %104 : vector<8x32xf32>
    %106 = arith.mulf %105, %105 : vector<8x32xf32>
    %cst_36 = arith.constant dense<0.000000e+00> : vector<8xf32>
    %107 = vector.multi_reduction <add>, %106, %cst_36 [1] : vector<8x32xf32> to vector<8xf32>
    %108 = vector.shape_cast %107 : vector<8xf32> to vector<8x1xf32>
    %cst_37 = arith.constant 3.200000e+01 : f32
    %109 = vector.broadcast %cst_37 : f32 to vector<8x1xf32>
    %110 = arith.divf %108, %109 : vector<8x1xf32>
    %cst_38 = arith.constant 9.99999996E-13 : f32
    %111 = vector.broadcast %cst_38 : f32 to vector<8x1xf32>
    %112 = arith.addf %110, %111 : vector<8x1xf32>
    %113 = math.rsqrt %112 : vector<8x1xf32>
    %114 = vector.broadcast %103 : vector<8x1xf32> to vector<8x32xf32>
    %115 = arith.subf %99, %114 : vector<8x32xf32>
    %116 = vector.broadcast %113 : vector<8x1xf32> to vector<8x32xf32>
    %117 = arith.mulf %115, %116 : vector<8x32xf32>
    %118 = vector.broadcast %31 : vector<1x32xf32> to vector<8x32xf32>
    %119 = arith.mulf %117, %118 : vector<8x32xf32>
    %120 = vector.broadcast %32 : vector<1x32xf32> to vector<8x32xf32>
    %121 = arith.addf %119, %120 : vector<8x32xf32>
    %122 = arith.truncf %121 : vector<8x32xf32> to vector<8x32xbf16>
    %c0_39 = arith.constant 0 : index
    %c0_40 = arith.constant 0 : index
    %c0_41 = arith.constant 0 : index
    %123 = vector.load %arg6[%c0_39, %c0_40, %c0_41] : memref<2x32x64xbf16, #tpu.memory_space<vmem>>, vector<1x32x64xbf16>
    %124 = vector.shape_cast %123 : vector<1x32x64xbf16> to vector<32x64xbf16>
    %cst_42 = arith.constant dense<0.000000e+00> : vector<8x64xf32>
    %125 = tpu.matmul %122, %124, %cst_42 {dimension_numbers = #tpu.dot_dimension_numbers<[1], [0], [0], [1], [0, 0, 1, 1], [], []>} : vector<8x32xbf16>, vector<32x64xbf16>, vector<8x64xf32> -> vector<8x64xf32>
    %126 = vector.broadcast %29 : vector<1x64xf32> to vector<8x64xf32>
    %127 = arith.addf %125, %126 : vector<8x64xf32>
    %cst_43 = arith.constant 5.000000e-01 : f32
    %128 = vector.broadcast %cst_43 : f32 to vector<8x64xf32>
    %129 = arith.mulf %128, %127 : vector<8x64xf32>
    %cst_44 = arith.constant 4.471500e-02 : f32
    %130 = vector.broadcast %cst_44 : f32 to vector<8x64xf32>
    %131 = arith.mulf %130, %127 : vector<8x64xf32>
    %132 = arith.mulf %131, %127 : vector<8x64xf32>
    %133 = arith.mulf %132, %127 : vector<8x64xf32>
    %134 = arith.addf %127, %133 : vector<8x64xf32>
    %cst_45 = arith.constant 0.797884583 : f32
    %135 = vector.broadcast %cst_45 : f32 to vector<8x64xf32>
    %136 = arith.mulf %135, %134 : vector<8x64xf32>
    %137 = math.tanh %136 : vector<8x64xf32>
    %cst_46 = arith.constant 1.000000e+00 : f32
    %138 = vector.broadcast %cst_46 : f32 to vector<8x64xf32>
    %139 = arith.addf %138, %137 : vector<8x64xf32>
    %140 = arith.mulf %129, %139 : vector<8x64xf32>
    %141 = arith.truncf %140 : vector<8x64xf32> to vector<8x64xbf16>
    %c0_47 = arith.constant 0 : index
    %c0_48 = arith.constant 0 : index
    %c0_49 = arith.constant 0 : index
    %142 = vector.load %arg7[%c0_47, %c0_48, %c0_49] : memref<2x64x32xbf16, #tpu.memory_space<vmem>>, vector<1x64x32xbf16>
    %143 = vector.shape_cast %142 : vector<1x64x32xbf16> to vector<64x32xbf16>
    %cst_50 = arith.constant dense<0.000000e+00> : vector<8x32xf32>
    %144 = tpu.matmul %141, %143, %cst_50 {dimension_numbers = #tpu.dot_dimension_numbers<[1], [0], [0], [1], [0, 0, 1, 1], [], []>} : vector<8x64xbf16>, vector<64x32xbf16>, vector<8x32xf32> -> vector<8x32xf32>
    %145 = vector.broadcast %33 : vector<1x32xf32> to vector<8x32xf32>
    %146 = arith.addf %144, %145 : vector<8x32xf32>
    %147 = arith.addf %121, %146 : vector<8x32xf32>
    %cst_51 = arith.constant dense<0.000000e+00> : vector<8xf32>
    %148 = vector.multi_reduction <add>, %147, %cst_51 [1] : vector<8x32xf32> to vector<8xf32>
    %149 = vector.shape_cast %148 : vector<8xf32> to vector<8x1xf32>
    %cst_52 = arith.constant 3.200000e+01 : f32
    %150 = vector.broadcast %cst_52 : f32 to vector<8x1xf32>
    %151 = arith.divf %149, %150 : vector<8x1xf32>
    %152 = vector.broadcast %151 : vector<8x1xf32> to vector<8x32xf32>
    %153 = arith.subf %147, %152 : vector<8x32xf32>
    %154 = arith.mulf %153, %153 : vector<8x32xf32>
    %cst_53 = arith.constant dense<0.000000e+00> : vector<8xf32>
    %155 = vector.multi_reduction <add>, %154, %cst_53 [1] : vector<8x32xf32> to vector<8xf32>
    %156 = vector.shape_cast %155 : vector<8xf32> to vector<8x1xf32>
    %cst_54 = arith.constant 3.200000e+01 : f32
    %157 = vector.broadcast %cst_54 : f32 to vector<8x1xf32>
    %158 = arith.divf %156, %157 : vector<8x1xf32>
    %cst_55 = arith.constant 9.99999996E-13 : f32
    %159 = vector.broadcast %cst_55 : f32 to vector<8x1xf32>
    %160 = arith.addf %158, %159 : vector<8x1xf32>
    %161 = math.rsqrt %160 : vector<8x1xf32>
    %162 = vector.broadcast %151 : vector<8x1xf32> to vector<8x32xf32>
    %163 = arith.subf %147, %162 : vector<8x32xf32>
    %164 = vector.broadcast %161 : vector<8x1xf32> to vector<8x32xf32>
    %165 = arith.mulf %163, %164 : vector<8x32xf32>
    %166 = vector.broadcast %34 : vector<1x32xf32> to vector<8x32xf32>
    %167 = arith.mulf %165, %166 : vector<8x32xf32>
    %168 = vector.broadcast %35 : vector<1x32xf32> to vector<8x32xf32>
    %169 = arith.addf %167, %168 : vector<8x32xf32>
    %c11 = arith.constant 11 : index
    %c0_56 = arith.constant 0 : index
    %170 = vector.load %arg3[%c11, %c0_56] : memref<24x128xf32, #tpu.memory_space<vmem>>, vector<1x96xf32>
    %c12 = arith.constant 12 : index
    %c0_57 = arith.constant 0 : index
    %171 = vector.load %arg3[%c12, %c0_57] : memref<24x128xf32, #tpu.memory_space<vmem>>, vector<1x64xf32>
    %c13 = arith.constant 13 : index
    %c0_58 = arith.constant 0 : index
    %172 = vector.load %arg3[%c13, %c0_58] : memref<24x128xf32, #tpu.memory_space<vmem>>, vector<1x32xf32>
    %c14 = arith.constant 14 : index
    %c0_59 = arith.constant 0 : index
    %173 = vector.load %arg3[%c14, %c0_59] : memref<24x128xf32, #tpu.memory_space<vmem>>, vector<1x32xf32>
    %c15 = arith.constant 15 : index
    %c0_60 = arith.constant 0 : index
    %174 = vector.load %arg3[%c15, %c0_60] : memref<24x128xf32, #tpu.memory_space<vmem>>, vector<1x32xf32>
    %c16 = arith.constant 16 : index
    %c0_61 = arith.constant 0 : index
    %175 = vector.load %arg3[%c16, %c0_61] : memref<24x128xf32, #tpu.memory_space<vmem>>, vector<1x32xf32>
    %c17 = arith.constant 17 : index
    %c0_62 = arith.constant 0 : index
    %176 = vector.load %arg3[%c17, %c0_62] : memref<24x128xf32, #tpu.memory_space<vmem>>, vector<1x32xf32>
    %c18 = arith.constant 18 : index
    %c0_63 = arith.constant 0 : index
    %177 = vector.load %arg3[%c18, %c0_63] : memref<24x128xf32, #tpu.memory_space<vmem>>, vector<1x32xf32>
    %178 = arith.truncf %169 : vector<8x32xf32> to vector<8x32xbf16>
    %c1_64 = arith.constant 1 : index
    %c0_65 = arith.constant 0 : index
    %c0_66 = arith.constant 0 : index
    %179 = vector.load %arg4[%c1_64, %c0_65, %c0_66] : memref<2x32x96xbf16, #tpu.memory_space<vmem>>, vector<1x32x96xbf16>
    %180 = vector.shape_cast %179 : vector<1x32x96xbf16> to vector<32x96xbf16>
    %cst_67 = arith.constant dense<0.000000e+00> : vector<8x96xf32>
    %181 = tpu.matmul %178, %180, %cst_67 {dimension_numbers = #tpu.dot_dimension_numbers<[1], [0], [0], [1], [0, 0, 1, 1], [], []>} : vector<8x32xbf16>, vector<32x96xbf16>, vector<8x96xf32> -> vector<8x96xf32>
    %182 = vector.broadcast %170 : vector<1x96xf32> to vector<8x96xf32>
    %183 = arith.addf %181, %182 : vector<8x96xf32>
    %184 = vector.extract_strided_slice %183 {offsets = [0, 0], sizes = [8, 8], strides = [1, 1]} : vector<8x96xf32> to vector<8x8xf32>
    %185 = vector.extract_strided_slice %183 {offsets = [0, 8], sizes = [8, 8], strides = [1, 1]} : vector<8x96xf32> to vector<8x8xf32>
    %186 = vector.extract_strided_slice %183 {offsets = [0, 16], sizes = [8, 8], strides = [1, 1]} : vector<8x96xf32> to vector<8x8xf32>
    %187 = vector.extract_strided_slice %183 {offsets = [0, 24], sizes = [8, 8], strides = [1, 1]} : vector<8x96xf32> to vector<8x8xf32>
    %188 = vector.shape_cast %184 : vector<8x8xf32> to vector<1x8x8xf32>
    %189 = vector.shape_cast %185 : vector<8x8xf32> to vector<1x8x8xf32>
    %190 = vector.shape_cast %186 : vector<8x8xf32> to vector<1x8x8xf32>
    %191 = vector.shape_cast %187 : vector<8x8xf32> to vector<1x8x8xf32>
    %192 = tpu.concatenate %188, %189, %190, %191 in 0 : vector<1x8x8xf32>, vector<1x8x8xf32>, vector<1x8x8xf32>, vector<1x8x8xf32> -> vector<4x8x8xf32>
    %193 = vector.extract_strided_slice %183 {offsets = [0, 32], sizes = [8, 8], strides = [1, 1]} : vector<8x96xf32> to vector<8x8xf32>
    %194 = vector.extract_strided_slice %183 {offsets = [0, 40], sizes = [8, 8], strides = [1, 1]} : vector<8x96xf32> to vector<8x8xf32>
    %195 = vector.extract_strided_slice %183 {offsets = [0, 48], sizes = [8, 8], strides = [1, 1]} : vector<8x96xf32> to vector<8x8xf32>
    %196 = vector.extract_strided_slice %183 {offsets = [0, 56], sizes = [8, 8], strides = [1, 1]} : vector<8x96xf32> to vector<8x8xf32>
    %197 = vector.shape_cast %193 : vector<8x8xf32> to vector<1x8x8xf32>
    %198 = vector.shape_cast %194 : vector<8x8xf32> to vector<1x8x8xf32>
    %199 = vector.shape_cast %195 : vector<8x8xf32> to vector<1x8x8xf32>
    %200 = vector.shape_cast %196 : vector<8x8xf32> to vector<1x8x8xf32>
    %201 = tpu.concatenate %197, %198, %199, %200 in 0 : vector<1x8x8xf32>, vector<1x8x8xf32>, vector<1x8x8xf32>, vector<1x8x8xf32> -> vector<4x8x8xf32>
    %202 = vector.extract_strided_slice %183 {offsets = [0, 64], sizes = [8, 8], strides = [1, 1]} : vector<8x96xf32> to vector<8x8xf32>
    %203 = vector.extract_strided_slice %183 {offsets = [0, 72], sizes = [8, 8], strides = [1, 1]} : vector<8x96xf32> to vector<8x8xf32>
    %204 = vector.extract_strided_slice %183 {offsets = [0, 80], sizes = [8, 8], strides = [1, 1]} : vector<8x96xf32> to vector<8x8xf32>
    %205 = vector.extract_strided_slice %183 {offsets = [0, 88], sizes = [8, 8], strides = [1, 1]} : vector<8x96xf32> to vector<8x8xf32>
    %206 = vector.shape_cast %202 : vector<8x8xf32> to vector<1x8x8xf32>
    %207 = vector.shape_cast %203 : vector<8x8xf32> to vector<1x8x8xf32>
    %208 = vector.shape_cast %204 : vector<8x8xf32> to vector<1x8x8xf32>
    %209 = vector.shape_cast %205 : vector<8x8xf32> to vector<1x8x8xf32>
    %210 = tpu.concatenate %206, %207, %208, %209 in 0 : vector<1x8x8xf32>, vector<1x8x8xf32>, vector<1x8x8xf32>, vector<1x8x8xf32> -> vector<4x8x8xf32>
    "tpu.trace_start"() <{level = 10 : i32, message = "hqd,hkd->hqk"}> : () -> ()
    %cst_68 = arith.constant dense<0.000000e+00> : vector<4x8x8xf32>
    %211 = tpu.matmul %192, %201, %cst_68 {dimension_numbers = #tpu.dot_dimension_numbers<[2], [2], [1], [1], [0, 0, 0, 1, 1, 1], [0], [0]>} : vector<4x8x8xf32>, vector<4x8x8xf32>, vector<4x8x8xf32> -> vector<4x8x8xf32>
    "tpu.trace_stop"() : () -> ()
    %cst_69 = arith.constant 0.353553385 : f32
    %212 = vector.broadcast %cst_69 : f32 to vector<4x8x8xf32>
    %213 = arith.mulf %211, %212 : vector<4x8x8xf32>
    %214 = vector.broadcast %3 : vector<1x1x8xf32> to vector<4x8x8xf32>
    %215 = arith.addf %213, %214 : vector<4x8x8xf32>
    %cst_70 = arith.constant dense<0xFF800000> : vector<4x8xf32>
    %216 = vector.multi_reduction <maximumf>, %215, %cst_70 [2] : vector<4x8x8xf32> to vector<4x8xf32>
    %217 = vector.shape_cast %216 : vector<4x8xf32> to vector<4x8x1xf32>
    %218 = vector.broadcast %217 : vector<4x8x1xf32> to vector<4x8x8xf32>
    %219 = arith.subf %215, %218 : vector<4x8x8xf32>
    %220 = math.exp %219 : vector<4x8x8xf32>
    %cst_71 = arith.constant dense<0.000000e+00> : vector<4x8xf32>
    %221 = vector.multi_reduction <add>, %220, %cst_71 [2] : vector<4x8x8xf32> to vector<4x8xf32>
    %222 = vector.shape_cast %221 : vector<4x8xf32> to vector<4x8x1xf32>
    %223 = vector.broadcast %222 : vector<4x8x1xf32> to vector<4x8x8xf32>
    %224 = arith.divf %220, %223 : vector<4x8x8xf32>
    "tpu.trace_start"() <{level = 10 : i32, message = "hqk,hkd->hqd"}> : () -> ()
    %cst_72 = arith.constant dense<0.000000e+00> : vector<4x8x8xf32>
    %225 = tpu.matmul %224, %210, %cst_72 {dimension_numbers = #tpu.dot_dimension_numbers<[2], [1], [1], [2], [0, 0, 0, 1, 1, 2], [0], [0]>} : vector<4x8x8xf32>, vector<4x8x8xf32>, vector<4x8x8xf32> -> vector<4x8x8xf32>
    "tpu.trace_stop"() : () -> ()
    %226 = vector.extract_strided_slice %225 {offsets = [0, 0, 0], sizes = [1, 8, 8], strides = [1, 1, 1]} : vector<4x8x8xf32> to vector<1x8x8xf32>
    %227 = vector.shape_cast %226 : vector<1x8x8xf32> to vector<8x8xf32>
    %228 = vector.extract_strided_slice %225 {offsets = [1, 0, 0], sizes = [1, 8, 8], strides = [1, 1, 1]} : vector<4x8x8xf32> to vector<1x8x8xf32>
    %229 = vector.shape_cast %228 : vector<1x8x8xf32> to vector<8x8xf32>
    %230 = vector.extract_strided_slice %225 {offsets = [2, 0, 0], sizes = [1, 8, 8], strides = [1, 1, 1]} : vector<4x8x8xf32> to vector<1x8x8xf32>
    %231 = vector.shape_cast %230 : vector<1x8x8xf32> to vector<8x8xf32>
    %232 = vector.extract_strided_slice %225 {offsets = [3, 0, 0], sizes = [1, 8, 8], strides = [1, 1, 1]} : vector<4x8x8xf32> to vector<1x8x8xf32>
    %233 = vector.shape_cast %232 : vector<1x8x8xf32> to vector<8x8xf32>
    %234 = tpu.concatenate %227, %229, %231, %233 in 1 : vector<8x8xf32>, vector<8x8xf32>, vector<8x8xf32>, vector<8x8xf32> -> vector<8x32xf32>
    %235 = arith.truncf %234 : vector<8x32xf32> to vector<8x32xbf16>
    %c1_73 = arith.constant 1 : index
    %c0_74 = arith.constant 0 : index
    %c0_75 = arith.constant 0 : index
    %236 = vector.load %arg5[%c1_73, %c0_74, %c0_75] : memref<2x32x32xbf16, #tpu.memory_space<vmem>>, vector<1x32x32xbf16>
    %237 = vector.shape_cast %236 : vector<1x32x32xbf16> to vector<32x32xbf16>
    %cst_76 = arith.constant dense<0.000000e+00> : vector<8x32xf32>
    %238 = tpu.matmul %235, %237, %cst_76 {dimension_numbers = #tpu.dot_dimension_numbers<[1], [0], [0], [1], [0, 0, 1, 1], [], []>} : vector<8x32xbf16>, vector<32x32xbf16>, vector<8x32xf32> -> vector<8x32xf32>
    %239 = vector.broadcast %172 : vector<1x32xf32> to vector<8x32xf32>
    %240 = arith.addf %238, %239 : vector<8x32xf32>
    %241 = arith.addf %169, %240 : vector<8x32xf32>
    %cst_77 = arith.constant dense<0.000000e+00> : vector<8xf32>
    %242 = vector.multi_reduction <add>, %241, %cst_77 [1] : vector<8x32xf32> to vector<8xf32>
    %243 = vector.shape_cast %242 : vector<8xf32> to vector<8x1xf32>
    %cst_78 = arith.constant 3.200000e+01 : f32
    %244 = vector.broadcast %cst_78 : f32 to vector<8x1xf32>
    %245 = arith.divf %243, %244 : vector<8x1xf32>
    %246 = vector.broadcast %245 : vector<8x1xf32> to vector<8x32xf32>
    %247 = arith.subf %241, %246 : vector<8x32xf32>
    %248 = arith.mulf %247, %247 : vector<8x32xf32>
    %cst_79 = arith.constant dense<0.000000e+00> : vector<8xf32>
    %249 = vector.multi_reduction <add>, %248, %cst_79 [1] : vector<8x32xf32> to vector<8xf32>
    %250 = vector.shape_cast %249 : vector<8xf32> to vector<8x1xf32>
    %cst_80 = arith.constant 3.200000e+01 : f32
    %251 = vector.broadcast %cst_80 : f32 to vector<8x1xf32>
    %252 = arith.divf %250, %251 : vector<8x1xf32>
    %cst_81 = arith.constant 9.99999996E-13 : f32
    %253 = vector.broadcast %cst_81 : f32 to vector<8x1xf32>
    %254 = arith.addf %252, %253 : vector<8x1xf32>
    %255 = math.rsqrt %254 : vector<8x1xf32>
    %256 = vector.broadcast %245 : vector<8x1xf32> to vector<8x32xf32>
    %257 = arith.subf %241, %256 : vector<8x32xf32>
    %258 = vector.broadcast %255 : vector<8x1xf32> to vector<8x32xf32>
    %259 = arith.mulf %257, %258 : vector<8x32xf32>
    %260 = vector.broadcast %173 : vector<1x32xf32> to vector<8x32xf32>
    %261 = arith.mulf %259, %260 : vector<8x32xf32>
    %262 = vector.broadcast %174 : vector<1x32xf32> to vector<8x32xf32>
    %263 = arith.addf %261, %262 : vector<8x32xf32>
    %264 = arith.truncf %263 : vector<8x32xf32> to vector<8x32xbf16>
    %c1_82 = arith.constant 1 : index
    %c0_83 = arith.constant 0 : index
    %c0_84 = arith.constant 0 : index
    %265 = vector.load %arg6[%c1_82, %c0_83, %c0_84] : memref<2x32x64xbf16, #tpu.memory_space<vmem>>, vector<1x32x64xbf16>
    %266 = vector.shape_cast %265 : vector<1x32x64xbf16> to vector<32x64xbf16>
    %cst_85 = arith.constant dense<0.000000e+00> : vector<8x64xf32>
    %267 = tpu.matmul %264, %266, %cst_85 {dimension_numbers = #tpu.dot_dimension_numbers<[1], [0], [0], [1], [0, 0, 1, 1], [], []>} : vector<8x32xbf16>, vector<32x64xbf16>, vector<8x64xf32> -> vector<8x64xf32>
    %268 = vector.broadcast %171 : vector<1x64xf32> to vector<8x64xf32>
    %269 = arith.addf %267, %268 : vector<8x64xf32>
    %cst_86 = arith.constant 5.000000e-01 : f32
    %270 = vector.broadcast %cst_86 : f32 to vector<8x64xf32>
    %271 = arith.mulf %270, %269 : vector<8x64xf32>
    %cst_87 = arith.constant 4.471500e-02 : f32
    %272 = vector.broadcast %cst_87 : f32 to vector<8x64xf32>
    %273 = arith.mulf %272, %269 : vector<8x64xf32>
    %274 = arith.mulf %273, %269 : vector<8x64xf32>
    %275 = arith.mulf %274, %269 : vector<8x64xf32>
    %276 = arith.addf %269, %275 : vector<8x64xf32>
    %cst_88 = arith.constant 0.797884583 : f32
    %277 = vector.broadcast %cst_88 : f32 to vector<8x64xf32>
    %278 = arith.mulf %277, %276 : vector<8x64xf32>
    %279 = math.tanh %278 : vector<8x64xf32>
    %cst_89 = arith.constant 1.000000e+00 : f32
    %280 = vector.broadcast %cst_89 : f32 to vector<8x64xf32>
    %281 = arith.addf %280, %279 : vector<8x64xf32>
    %282 = arith.mulf %271, %281 : vector<8x64xf32>
    %283 = arith.truncf %282 : vector<8x64xf32> to vector<8x64xbf16>
    %c1_90 = arith.constant 1 : index
    %c0_91 = arith.constant 0 : index
    %c0_92 = arith.constant 0 : index
    %284 = vector.load %arg7[%c1_90, %c0_91, %c0_92] : memref<2x64x32xbf16, #tpu.memory_space<vmem>>, vector<1x64x32xbf16>
    %285 = vector.shape_cast %284 : vector<1x64x32xbf16> to vector<64x32xbf16>
    %cst_93 = arith.constant dense<0.000000e+00> : vector<8x32xf32>
    %286 = tpu.matmul %283, %285, %cst_93 {dimension_numbers = #tpu.dot_dimension_numbers<[1], [0], [0], [1], [0, 0, 1, 1], [], []>} : vector<8x64xbf16>, vector<64x32xbf16>, vector<8x32xf32> -> vector<8x32xf32>
    %287 = vector.broadcast %175 : vector<1x32xf32> to vector<8x32xf32>
    %288 = arith.addf %286, %287 : vector<8x32xf32>
    %289 = arith.addf %263, %288 : vector<8x32xf32>
    %cst_94 = arith.constant dense<0.000000e+00> : vector<8xf32>
    %290 = vector.multi_reduction <add>, %289, %cst_94 [1] : vector<8x32xf32> to vector<8xf32>
    %291 = vector.shape_cast %290 : vector<8xf32> to vector<8x1xf32>
    %cst_95 = arith.constant 3.200000e+01 : f32
    %292 = vector.broadcast %cst_95 : f32 to vector<8x1xf32>
    %293 = arith.divf %291, %292 : vector<8x1xf32>
    %294 = vector.broadcast %293 : vector<8x1xf32> to vector<8x32xf32>
    %295 = arith.subf %289, %294 : vector<8x32xf32>
    %296 = arith.mulf %295, %295 : vector<8x32xf32>
    %cst_96 = arith.constant dense<0.000000e+00> : vector<8xf32>
    %297 = vector.multi_reduction <add>, %296, %cst_96 [1] : vector<8x32xf32> to vector<8xf32>
    %298 = vector.shape_cast %297 : vector<8xf32> to vector<8x1xf32>
    %cst_97 = arith.constant 3.200000e+01 : f32
    %299 = vector.broadcast %cst_97 : f32 to vector<8x1xf32>
    %300 = arith.divf %298, %299 : vector<8x1xf32>
    %cst_98 = arith.constant 9.99999996E-13 : f32
    %301 = vector.broadcast %cst_98 : f32 to vector<8x1xf32>
    %302 = arith.addf %300, %301 : vector<8x1xf32>
    %303 = math.rsqrt %302 : vector<8x1xf32>
    %304 = vector.broadcast %293 : vector<8x1xf32> to vector<8x32xf32>
    %305 = arith.subf %289, %304 : vector<8x32xf32>
    %306 = vector.broadcast %303 : vector<8x1xf32> to vector<8x32xf32>
    %307 = arith.mulf %305, %306 : vector<8x32xf32>
    %308 = vector.broadcast %176 : vector<1x32xf32> to vector<8x32xf32>
    %309 = arith.mulf %307, %308 : vector<8x32xf32>
    %310 = vector.broadcast %177 : vector<1x32xf32> to vector<8x32xf32>
    %311 = arith.addf %309, %310 : vector<8x32xf32>
    %312 = vector.extract_strided_slice %311 {offsets = [0, 0], sizes = [1, 32], strides = [1, 1]} : vector<8x32xf32> to vector<1x32xf32>
    %313 = arith.subf %312, %2 : vector<1x32xf32>
    %314 = arith.mulf %313, %313 : vector<1x32xf32>
    %cst_99 = arith.constant dense<0.000000e+00> : vector<1xf32>
    %315 = vector.multi_reduction <add>, %314, %cst_99 [1] : vector<1x32xf32> to vector<1xf32>
    %316 = vector.shape_cast %315 : vector<1xf32> to vector<1x1xf32>
    %cst_100 = arith.constant 0.000000e+00 : f32
    %317 = vector.broadcast %cst_100 : f32 to vector<1x1x128xf32>
    %c0_101 = arith.constant 0 : index
    %c0_102 = arith.constant 0 : index
    %c0_103 = arith.constant 0 : index
    %318 = vector.load %arg8[%c0_101, %c0_102, %c0_103] : memref<1x1x128xf32, #tpu.memory_space<vmem>>, vector<1x1x128xf32>
    tpu.vector_store %arg8[%c0_101, %c0_102, %c0_103], %317 {strides = array<i32>} : memref<1x1x128xf32, #tpu.memory_space<vmem>>, vector<1x1x128xf32>,
    %319 = vector.shape_cast %312 : vector<1x32xf32> to vector<1x1x32xf32>
    %c0_104 = arith.constant 0 : index
    %c0_105 = arith.constant 0 : index
    %c0_106 = arith.constant 0 : index
    %320 = vector.load %arg8[%c0_104, %c0_105, %c0_106] : memref<1x1x128xf32, #tpu.memory_space<vmem>>, vector<1x1x32xf32>
    tpu.vector_store %arg8[%c0_104, %c0_105, %c0_106], %319 {strides = array<i32>} : memref<1x1x128xf32, #tpu.memory_space<vmem>>, vector<1x1x32xf32>,
    %321 = vector.shape_cast %316 : vector<1x1xf32> to vector<1x1x1xf32>
    %c0_107 = arith.constant 0 : index
    %c0_108 = arith.constant 0 : index
    %c32 = arith.constant 32 : index
    %322 = vector.load %arg8[%c0_107, %c0_108, %c32] : memref<1x1x128xf32, #tpu.memory_space<vmem>>, vector<1x1x1xf32>
    tpu.vector_store %arg8[%c0_107, %c0_108, %c32], %321 {strides = array<i32>} : memref<1x1x128xf32, #tpu.memory_space<vmem>>, vector<1x1x1xf32>,
    return
  }
  func.func @transform_0(%arg0: i32) -> (i32, i32, i32) {
    %c0_i32 = arith.constant 0 : i32
    %c0_i32_0 = arith.constant 0 : i32
    %c0_i32_1 = arith.constant 0 : i32
    return %arg0, %c0_i32, %c0_i32_0 : i32, i32, i32
  }
  func.func @transform_1(%arg0: i32) -> (i32, i32, i32) {
    %c0_i32 = arith.constant 0 : i32
    %c0_i32_0 = arith.constant 0 : i32
    %c0_i32_1 = arith.constant 0 : i32
    return %arg0, %c0_i32, %c0_i32_0 : i32, i32, i32
  }
  func.func @transform_2(%arg0: i32) -> (i32, i32) {
    %c0_i32 = arith.constant 0 : i32
    %c0_i32_0 = arith.constant 0 : i32
    %c0_i32_1 = arith.constant 0 : i32
    return %c0_i32, %c0_i32_0 : i32, i32
  }
  func.func @transform_3(%arg0: i32) -> (i32, i32, i32) {
    %c0_i32 = arith.constant 0 : i32
    %c0_i32_0 = arith.constant 0 : i32
    %c0_i32_1 = arith.constant 0 : i32
    %c0_i32_2 = arith.constant 0 : i32
    return %c0_i32, %c0_i32_0, %c0_i32_1 : i32, i32, i32
  }
  func.func @transform_4(%arg0: i32) -> (i32, i32, i32) {
    %c0_i32 = arith.constant 0 : i32
    %c0_i32_0 = arith.constant 0 : i32
    %c0_i32_1 = arith.constant 0 : i32
    %c0_i32_2 = arith.constant 0 : i32
    return %c0_i32, %c0_i32_0, %c0_i32_1 : i32, i32, i32
  }
  func.func @transform_5(%arg0: i32) -> (i32, i32, i32) {
    %c0_i32 = arith.constant 0 : i32
    %c0_i32_0 = arith.constant 0 : i32
    %c0_i32_1 = arith.constant 0 : i32
    %c0_i32_2 = arith.constant 0 : i32
    return %c0_i32, %c0_i32_0, %c0_i32_1 : i32, i32, i32
  }
  func.func @transform_6(%arg0: i32) -> (i32, i32, i32) {
    %c0_i32 = arith.constant 0 : i32
    %c0_i32_0 = arith.constant 0 : i32
    %c0_i32_1 = arith.constant 0 : i32
    %c0_i32_2 = arith.constant 0 : i32
    return %c0_i32, %c0_i32_0, %c0_i32_1 : i32, i32, i32
  }
  func.func @transform_7(%arg0: i32) -> (i32, i32, i32) {
    %c0_i32 = arith.constant 0 : i32
    %c0_i32_0 = arith.constant 0 : i32
    %c0_i32_1 = arith.constant 0 : i32
    return %arg0, %c0_i32, %c0_i32_0 : i32, i32, i32
  }
}

</mosaic_0001>

<bundles_post_ra>
// kernel: logbert_vhm_forward.1
= control target key start
LH: loop header
LB: loop body
LE: loop exit
PB: predicated region body
PF: predicated region fallthrough
CT: control target
= control target key end

     0   :  { %s2888_s24 = smov 0   ;;  %s3260_s0 = inlined_call_operand.vmem [shape: f32[2,8,32], index: 0, kind: input, shape index: {}]   ;;  %s3261_s1 = inlined_call_operand.vmem [shape: f32[2,1,8], index: 1, kind: input, shape index: {}]   ;;  %s3262_s2 = inlined_call_operand.vmem [shape: f32[24,128], index: 2, kind: input, shape index: {}]   ;;  %s3263_s3 = inlined_call_operand.vmem [shape: bf16[2,32,96], index: 3, kind: input, shape index: {}]   ;;  %s3264_s4 = inlined_call_operand.vmem [shape: bf16[2,32,32], index: 4, kind: input, shape index: {}]   ;;  %s3265_s5 = inlined_call_operand.vmem [shape: bf16[2,32,64], index: 5, kind: input, shape index: {}]   ;;  %s3266_s6 = inlined_call_operand.vmem [shape: bf16[2,64,32], index: 6, kind: input, shape index: {}]   ;;  %s3267_s7 = inlined_call_operand.vmem [shape: f32[2,1,128], index: 7, kind: output, shape index: {}]  }
   0x1 LB: > { %s2435_s25 = sadd.s32 4294967295, %s2836_s24   ;;  %p2439_p0 = scmp.ge.s32.totalorder %s2836_s24, 1  ;;  %s2836_s24 = sphi %s2888_s24, %s17_s24  }
   0x2   : > { %p244_p1 = scmp.lt.s32.totalorder %s2836_s24, 3 }
   0x4   : > { %p245_p2 = pnand %p2439_p0, %p244_p1 }
   0x5   : > { %p276_p3 = scmp.lt.s32.totalorder (!%p245_p2), %s2435_s25, 1  ;;  %s2840_s17 = smov (!%p245_p2), 104  }
   0x6   : > { %248 = sbr.rel (%p245_p2) target bundleno = 5454 (0x154e), region = 48  ;;  %s2841_s18 = smov (!%p245_p2), 120  }
   0x7   : > { %s2842_s19 = smov (!%p245_p2), 112   ;;  %s2843_s20 = smov (!%p245_p2), 96  }
   0x8   : > { %s2845_s8 = smov (!%p245_p2), 8   ;;  %s2846_s9 = smov (!%p245_p2), 16  }
   0x9   : > { %s2847_s10 = smov (!%p245_p2), 24  }
   0xb   : > { %s3269_s25 = smov (!%p276_p3, %s2435_s25), 1  ;;  %vm292_vm0 = vcmask 261120   ;;  %v2764_v7 = vld [vmem:[%s3263_s3 + $0x8] sm:$0xff]   ;;  %v2838_v8 = vmov 0.0   ;;  %vm2839_vm1 = vmmov 0   ;;  %v2765_v9 = vld [vmem:[%s3263_s3] sm:$0xff]  }
   0xc   : > { %s2440_s26 = sshll.u32 %s3269_s25, 3  ;;  %2594 = vmatprep.subr.bf16.mxu0 %v2838_v8  ;;  %2598 = vmatprep.mubr.msk.bf16.mxu0 %vm2839_vm1, %v2838_v8  ;;  %v2441_v14 = vld [vmem:[%s3262_s2] ss:$0 sm:$0xff]  ;;  %v2442_v16 = vld [vmem:[%s3262_s2 + $0x1] ss:$0 sm:$0xff]  ;;  %vm398_vm2 = vcmask 64512   ;;  %s282_s23 = scalar_lea.vmem %s3261_s1, %s3269_s25 }
   0xd   : > { %s279_s29 = scalar_lea.vmem %s3260_s0, %s2440_s26  ;;  %2595 = vmatpush3.bf16.msra.mxu0 %v2764_v7  ;;  %2607 = vmatprep.subr.mxu1 %v2838_v8  ;;  %v2443_v20 = vld [vmem:[%s3262_s2 + $0x3] ss:$0 sm:$0xff]  ;;  %v2980_v33 = vld [vmem:[%s282_s23] ss:$0 sm:$0xff]  ;;  %s2844_s26 = smov 64   ;;  %vm1076_vm3 = vcmask 130048  }
   0xe   : > { %v291_v0 = vld [vmem:[%s279_s29] sm:$0xff]  ;;  %2596 = vmatprep.subr.bf16.mxu0 %v2838_v8  ;;  %2609 = vmatprep.mubr.msk.f32.mxu1 %vm2839_vm1, %v2838_v8  ;;  %vm1078_vm4 = vcmask 195584   ;;  %vm1278_vm5 = vcmask 523264   ;;  %vm2371_vm6 = vcmask 253952   ;;  %vm2377_vm7 = vcmask 262400  }
   0xf   : > { %v293_v1 = vsel %vm292_vm0, %v291_v0, 0.0 }
  0x10   : > { %294 = vadd.xlane.f32.xlu0 %v293_v1 }
  0x11   : > { %2597 = vmatpush3.bf16.msra.mxu0 %v2765_v9 }
  0x12   : > { %2602 = vmatprep.subr.mxu0 %v2838_v8 }
  0x99   : > { %v295_v2 = vpop.xlane.xlu0 %294 }
  0x9a   : > { %v297_v3 = vmul.f32 0.03125, %v295_v2 }
  0x9c   : > { %v298_v4 = vsub.f32 %v291_v0, %v297_v3 }
  0x9e   : > { %v299_v5 = vmul.f32 %v298_v4, %v298_v4 }
  0xa0   : > { %v300_v6 = vsel %vm292_vm0, %v299_v5, 0.0 }
  0xa1   : > { %301 = vadd.xlane.f32.xlu0 %v300_v6 }
 0x12a   : > { %v302_v10 = vpop.xlane.xlu0 %301 }
 0x12b   : > { %v303_v11 = vmul.f32 0.03125, %v302_v10 }
 0x12d   : > { %v304_v12 = vadd.f32 1e-12, %v303_v11 }
 0x12f   : > { %2784 = vrsqrt.f32 %v304_v12 }
 0x13c   : > { %v2785_v13 = vpop.eup %2784 }
 0x13d   : > { %v306_v15 = vmul.f32 %v2785_v13, %v298_v4 }
 0x13f   : > { %v311_v17 = vmul.f32 %v2441_v14, %v306_v15 }
 0x141   : > { %v2924_v18 = vadd.f32 %v2442_v16, %v311_v17 }
 0x143   : > { %v325_v19 = vpack.c.bf16 %v2924_v18, %v2924_v18 }
 0x145   : > { %2599 = vmatmul.mubr.msk.bf16.vlgmr.msra.gmra.mxu0 %vm292_vm0, %v325_v19 }
 0x146   : > { %2604 = vmatprep.mubr.msk.f32.mxu0 %vm2839_vm1, %v2838_v8 }
 0x205   : > { %v383_v21 = vpop.f32.mrf.mxu0 }
 0x206   : > { %v2934_v22 = vadd.f32 %v2443_v20, %v383_v21 }
 0x207   : > { %v2600_v23 = vpop.f32.mrf.mxu0 }
 0x208   : > { %394 = vrot.lane.b32.xlu0 %v2934_v22, %s2840_s17  ;;  %390 = vrot.lane.b32.xlu1 %v2934_v22, %s2841_s18 }
 0x209   : > { %v386_v24 = vpop.f32.mrf.mxu0 }
 0x20b   : > { %v2601_v25 = vpop.f32.mrf.mxu0 }
 0x20c   : > { %392 = vrot.lane.b32.xlu1 %v2934_v22, %s2842_s19 }
 0x210   : > { %396 = vrot.lane.b32.xlu1 %v2934_v22, %s2843_s20 }
 0x27a   : > { %v2944_v26 = vpop.permute.xlu1 %390  ;;  %v2949_v28 = vpop.permute.xlu0 %394 }
 0x27b   : > { %473 = vrot.lane.b32.xlu1 %v2944_v26, %s2843_s20 }
 0x27e   : > { %v393_v27 = vpop.permute.xlu1 %392 }
 0x27f   : > { %549 = vrot.lane.b32.xlu1 %v393_v27, %s2843_s20 }
 0x282   : > { %v397_v29 = vpop.permute.xlu1 %396 }
 0x283   : > { %625 = vrot.lane.b32.xlu1 %v2949_v28, %s2843_s20  ;;  %2603 = vmatpush3.xpose.msk.msra.mxu0 %vm398_vm2, %v397_v29 }
 0x284   : > { %2617 = vmatprep.subr.mxu0 %v2838_v8 }
 0x286   : > { %2605 = vmatmul.mubr.msk.f32.vlgmr.msra.gmra.mxu0 %vm398_vm2, %v2934_v22 }
 0x287   : > { %2619 = vmatprep.mubr.msk.f32.mxu0 %vm2839_vm1, %v2838_v8 }
 0x2ed   : > { %v474_v30 = vpop.permute.xlu1 %473 }
 0x2ee   : > { %2608 = vmatpush3.xpose.msk.msra.mxu1 %vm398_vm2, %v474_v30  ;;  %v2766_v30 = vld [vmem:[%s3264_s4 + $0x8] sm:$0xff]  }
 0x2ef   : > { %2612 = vmatprep.subr.mxu1 %v2838_v8 }
 0x2f1   : > { %2610 = vmatmul.mubr.msk.f32.vlgmr.msra.gmra.mxu1 %vm398_vm2, %v2944_v26  ;;  %v550_v31 = vpop.permute.xlu1 %549 }
 0x2f2   : > { %2613 = vmatpush3.xpose.msk.msra.mxu1 %vm398_vm2, %v550_v31  ;;  %2614 = vmatprep.mubr.msk.f32.mxu1 %vm2839_vm1, %v2838_v8  ;;  %v2767_v31 = vld [vmem:[%s3264_s4] sm:$0xff]  }
 0x2f3   : > { %2622 = vmatprep.subr.mxu1 %v2838_v8 }
 0x2f5   : > { %2615 = vmatmul.mubr.msk.f32.vlgmr.msra.gmra.mxu1 %vm398_vm2, %v393_v27  ;;  %v626_v32 = vpop.permute.xlu1 %625 }
 0x2f6   : > { %2618 = vmatpush3.xpose.msk.msra.mxu0 %vm398_vm2, %v626_v32  ;;  %2624 = vmatprep.mubr.msk.f32.mxu1 %vm2839_vm1, %v2838_v8 }
 0x2f7   : > { %2627 = vmatprep.subr.mxu0 %v2838_v8 }
 0x2f9   : > { %2620 = vmatmul.mubr.msk.f32.vlgmr.msra.gmra.mxu0 %vm398_vm2, %v2949_v28 }
 0x2fa   : > { %2629 = vmatprep.mubr.msk.f32.mxu0 %vm2839_vm1, %v2838_v8 }
 0x346   : > { %v469_v34 = vpop.f32.mrf.mxu0 }
 0x347   : > { %v701_v35 = vmul.f32 0.35355338, %v469_v34 }
 0x348   : > { %v2606_v36 = vpop.f32.mrf.mxu0 }
 0x349   : > { %v711_v37 = vadd.f32 %v2980_v33, %v701_v35 }
 0x34b   : > { %v715_v38 = vsel %vm398_vm2, %v711_v37, -inf }
 0x34c   : > { %716 = vmax.xlane.f32.xlu1 %v715_v38 }
 0x3b1   : > { %v545_v39 = vpop.f32.mrf.mxu1 }
 0x3b2   : > { %v702_v40 = vmul.f32 0.35355338, %v545_v39 }
 0x3b3   : > { %v2611_v41 = vpop.f32.mrf.mxu1 }
 0x3b4   : > { %v712_v42 = vadd.f32 %v2980_v33, %v702_v40 }
 0x3b5   : > { %v621_v43 = vpop.f32.mrf.mxu1 }
 0x3b6   : > { %v703_v44 = vmul.f32 0.35355338, %v621_v43  ;;  %v718_v45 = vsel %vm398_vm2, %v712_v42, -inf }
 0x3b7   : > { %719 = vmax.xlane.f32.xlu0 %v718_v45  ;;  %v2616_v46 = vpop.f32.mrf.mxu1 }
 0x3b8   : > { %v713_v47 = vadd.f32 %v2980_v33, %v703_v44  ;;  %v2460_v46 = vld [vmem:[%s3262_s2 + $0x5] ss:$0 sm:$0xff] }
 0x3b9   : > { %v697_v48 = vpop.f32.mrf.mxu0 }
 0x3ba   : > { %v704_v49 = vmul.f32 0.35355338, %v697_v48  ;;  %v721_v50 = vsel %vm398_vm2, %v713_v47, -inf }
 0x3bb   : > { %722 = vmax.xlane.f32.xlu1 %v721_v50  ;;  %v2621_v51 = vpop.f32.mrf.mxu0 }
 0x3bc   : > { %v714_v52 = vadd.f32 %v2980_v33, %v704_v49 }
 0x3be   : > { %v724_v53 = vsel %vm398_vm2, %v714_v52, -inf }
 0x3bf   : > { %725 = vmax.xlane.f32.xlu0 %v724_v53 }
 0x3cc   : > { %759 = vrot.lane.b32.xlu1 %v2934_v22, %s2844_s26 }
 0x3d5   : > { %v717_v54 = vpop.xlane.xlu1 %716 }
 0x3d6   : > { %v727_v55 = vsub.f32 %v711_v37, %v717_v54 }
 0x3d8   : > { %v731_v56 = vmul.f32 1.442695, %v727_v55 }
 0x3da   : > { %2786 = vpow2.f32 %v731_v56 }
 0x3e7   : > { %v2787_v57 = vpop.eup %2786 }
 0x3e8   : > { %v739_v58 = vsel %vm398_vm2, %v2787_v57, 0.0 }
 0x3f0   : > { %740 = vadd.xlane.f32.xlu1 %v739_v58 }
 0x401   : > { %911 = vrot.lane.b32.xlu1 %v393_v27, %s2844_s26 }
 0x440   : > { %v720_v59 = vpop.xlane.xlu0 %719 }
 0x441   : > { %v728_v60 = vsub.f32 %v712_v42, %v720_v59  ;;  %v2768_v59 = vld [vmem:[%s3265_s5 + $0x8] sm:$0xff]  }
 0x443   : > { %v733_v61 = vmul.f32 1.442695, %v728_v60 }
 0x444   : > { %v723_v62 = vpop.xlane.xlu1 %722 }
 0x445   : > { %2788 = vpow2.f32 %v733_v61  ;;  %v729_v63 = vsub.f32 %v713_v47, %v723_v62 }
 0x447   : > { %v735_v0 = vmul.f32 1.442695, %v729_v63 }
 0x448   : > { %v760_v1 = vpop.permute.xlu1 %759  ;;  %v726_v2 = vpop.xlane.xlu0 %725 }
 0x449   : > { %2790 = vpow2.f32 %v735_v0  ;;  %v730_v3 = vsub.f32 %v714_v52, %v726_v2  ;;  %2623 = vmatpush3.msra.mxu1 %v760_v1  ;;  %v2464_v0 = vld [vmem:[%s3262_s2 + $0x6] ss:$0 sm:$0xff]  ;;  %v2465_v2 = vld [vmem:[%s3262_s2 + $0x7] ss:$0 sm:$0xff] }
 0x44a   : > { %2632 = vmatprep.subr.mxu1 %v2838_v8 }
 0x44b   : > { %v737_v4 = vmul.f32 1.442695, %v730_v3 }
 0x44d   : > { %2792 = vpow2.f32 %v737_v4 }
 0x452   : > { %v2789_v5 = vpop.eup %2788 }
 0x453   : > { %v742_v6 = vsel %vm398_vm2, %v2789_v5, 0.0 }
 0x454   : > { %743 = vadd.xlane.f32.xlu0 %v742_v6  ;;  %v2770_v6 = vld [vmem:[%s3266_s6 + $0x18] sm:$0xff]  }
 0x456   : > { %v2791_v7 = vpop.eup %2790 }
 0x457   : > { %v745_v9 = vsel %vm398_vm2, %v2791_v7, 0.0 }
 0x458   : > { %746 = vadd.xlane.f32.xlu1 %v745_v9  ;;  %v2772_v9 = vld [vmem:[%s3266_s6 + $0x8] sm:$0xff]  }
 0x45a   : > { %v2793_v10 = vpop.eup %2792 }
 0x45b   : > { %v748_v11 = vsel %vm398_vm2, %v2793_v10, 0.0 }
 0x45c   : > { %749 = vadd.xlane.f32.xlu0 %v748_v11  ;;  %v2466_v11 = vld [vmem:[%s3262_s2 + $0x4] ss:$0 sm:$0xff] }
 0x469   : > { %987 = vrot.lane.b32.xlu1 %v2949_v28, %s2844_s26 }
 0x472   : > { %835 = vrot.lane.b32.xlu0 %v2944_v26, %s2844_s26 }
 0x479   : > { %v741_v12 = vpop.xlane.xlu1 %740 }
 0x47a   : > { %2794 = vrcp.f32 %v741_v12 }
 0x47d   : > { %v912_v15 = vpop.permute.xlu1 %911 }
 0x487   : > { %v2795_v13 = vpop.eup %2794 }
 0x488   : > { %v752_v14 = vmul.f32 %v2795_v13, %v2787_v57 }
 0x48a   : > { %2625 = vmatmul.mubr.msk.f32.vlgmr.msra.gmra.mxu1 %vm398_vm2, %v752_v14 }
 0x48b   : > { %2633 = vmatpush3.msra.mxu1 %v912_v15  ;;  %2634 = vmatprep.mubr.msk.f32.mxu1 %vm2839_vm1, %v2838_v8 }
 0x48c   : > { %2642 = vmatprep.subr.bf16.mxu1 %v2838_v8 }
 0x4dd   : > { %v744_v16 = vpop.xlane.xlu0 %743 }
 0x4de   : > { %2796 = vrcp.f32 %v744_v16 }
 0x4e1   : > { %v747_v17 = vpop.xlane.xlu1 %746 }
 0x4e2   : > { %2798 = vrcp.f32 %v747_v17 }
 0x4e5   : > { %v750_v19 = vpop.xlane.xlu0 %749  ;;  %v988_v23 = vpop.permute.xlu1 %987 }
 0x4e6   : > { %2800 = vrcp.f32 %v750_v19 }
 0x4e9   : > { %v836_v20 = vpop.permute.xlu0 %835 }
 0x4ea   : > { %2628 = vmatpush3.msra.mxu0 %v836_v20 }
 0x4eb   : > { %v2797_v21 = vpop.eup %2796  ;;  %2637 = vmatprep.subr.mxu0 %v2838_v8 }
 0x4ec   : > { %v754_v22 = vmul.f32 %v2797_v21, %v2789_v5 }
 0x4ee   : > { %2630 = vmatmul.mubr.msk.f32.vlgmr.msra.gmra.mxu0 %vm398_vm2, %v754_v22 }
 0x4ef   : > { %v2799_v24 = vpop.eup %2798  ;;  %2638 = vmatpush3.msra.mxu0 %v988_v23  ;;  %2639 = vmatprep.mubr.msk.f32.mxu0 %vm2839_vm1, %v2838_v8 }
 0x4f0   : > { %v756_v25 = vmul.f32 %v2799_v24, %v2791_v7  ;;  %2650 = vmatprep.subr.bf16.mxu0 %v2838_v8  ;;  %v2771_v7 = vld [vmem:[%s3266_s6 + $0x10] sm:$0xff]  }
 0x4f2   : > { %2635 = vmatmul.mubr.msk.f32.vlgmr.msra.gmra.mxu1 %vm398_vm2, %v756_v25 }
 0x4f3   : > { %v2801_v26 = vpop.eup %2800  ;;  %2646 = vmatprep.mubr.msk.bf16.mxu1 %vm2839_vm1, %v2838_v8  ;;  %2643 = vmatpush3.bf16.msra.mxu1 %v2766_v30 }
 0x4f4   : > { %v758_v27 = vmul.f32 %v2801_v26, %v2793_v10  ;;  %2644 = vmatprep.subr.bf16.mxu1 %v2838_v8  ;;  %v2773_v10 = vld [vmem:[%s3266_s6] sm:$0xff]  }
 0x4f6   : > { %2640 = vmatmul.mubr.msk.f32.vlgmr.msra.gmra.mxu0 %vm398_vm2, %v758_v27 }
 0x4f7   : > { %2654 = vmatprep.mubr.msk.bf16.mxu0 %vm2839_vm1, %v2838_v8  ;;  %2645 = vmatpush3.bf16.msra.mxu1 %v2767_v31 }
 0x4f8   : > { %2658 = vmatprep.subr.bf16.mxu1 %v2838_v8  ;;  %2651 = vmatpush3.bf16.msra.mxu0 %v2768_v59 }
 0x4f9   : > { %2652 = vmatprep.subr.bf16.mxu0 %v2838_v8 }
 0x54a   : > { %v831_v28 = vpop.f32.mrf.mxu1 }
 0x54c   : > { %v2626_v29 = vpop.f32.mrf.mxu1 }
 0x5ae   : > { %v907_v32 = vpop.f32.mrf.mxu0 }
 0x5af   : > { %1064 = vrot.lane.b32.xlu0 %v907_v32, %s2845_s8 }
 0x5b0   : > { %v2631_v34 = vpop.f32.mrf.mxu0 }
 0x5b2   : > { %v983_v35 = vpop.f32.mrf.mxu1 }
 0x5b3   : > { %1068 = vrot.lane.b32.xlu1 %v983_v35, %s2846_s9 }
 0x5b4   : > { %v2636_v36 = vpop.f32.mrf.mxu1 }
 0x5b6   : > { %v1059_v37 = vpop.f32.mrf.mxu0 }
 0x5b7   : > { %1072 = vrot.lane.b32.xlu0 %v1059_v37, %s2847_s10 }
 0x5b8   : > { %v2641_v38 = vpop.f32.mrf.mxu0 }
 0x621   : > { %v1065_v39 = vpop.permute.xlu0 %1064 }
 0x622   : > { %v1075_v41 = vsel %vm398_vm2, %v831_v28, %v1065_v39  ;;  %v2470_v28 = vld [vmem:[%s3262_s2 + $0x8] ss:$0 sm:$0xff] }
 0x625   : > { %v1069_v40 = vpop.permute.xlu1 %1068 }
 0x626   : > { %v1077_v42 = vsel %vm1076_vm3, %v1075_v41, %v1069_v40 }
 0x629   : > { %v1073_v43 = vpop.permute.xlu0 %1072 }
 0x62a   : > { %v1079_v44 = vsel %vm1078_vm4, %v1077_v42, %v1073_v43  ;;  %v2774_v42 = vld [vmem:[%s3263_s3 + $0x18] sm:$0xff]   ;;  %v2775_v43 = vld [vmem:[%s3263_s3 + $0x10] sm:$0xff]  }
 0x62b   : > { %v1080_v45 = vpack.c.bf16 %v1079_v44, %v1079_v44 }
 0x62d   : > { %2647 = vmatmul.mubr.msk.bf16.vlgmr.msra.gmra.mxu1 %vm292_vm0, %v1080_v45 }
 0x62e   : > { %2666 = vmatprep.mubr.msk.bf16.mxu1 %vm2839_vm1, %v2838_v8  ;;  %2659 = vmatpush3.bf16.msra.mxu1 %v2770_v6 }
 0x62f   : > { %2660 = vmatprep.subr.bf16.mxu1 %v2838_v8 }
 0x632   : > { %2661 = vmatpush3.bf16.msra.mxu1 %v2771_v7 }
 0x633   : > { %2662 = vmatprep.subr.bf16.mxu1 %v2838_v8 }
 0x636   : > { %2663 = vmatpush3.bf16.msra.mxu1 %v2772_v9 }
 0x637   : > { %2664 = vmatprep.subr.bf16.mxu1 %v2838_v8 }
 0x63a   : > { %2665 = vmatpush3.bf16.msra.mxu1 %v2773_v10 }
 0x63b   : > { %2688 = vmatprep.subr.mxu1 %v2838_v8 }
 0x6ed   : > { %v1138_v47 = vpop.f32.mrf.mxu1 }
 0x6ee   : > { %v1139_v48 = vadd.f32 %v2460_v46, %v1138_v47 }
 0x6ef   : > { %v2648_v49 = vpop.f32.mrf.mxu1 }
 0x6f0   : > { %v1144_v50 = vadd.f32 %v1139_v48, %v2924_v18  ;;  %v2769_v18 = vld [vmem:[%s3265_s5] sm:$0xff]   ;;  %v2476_v48 = vld [vmem:[%s3262_s2 + $0x9] ss:$0 sm:$0xff] }
 0x6f1   : > { %v1141_v51 = vpop.f32.mrf.mxu1  ;;  %2653 = vmatpush3.bf16.msra.mxu0 %v2769_v18 }
 0x6f2   : > { %v1145_v52 = vsel %vm292_vm0, %v1144_v50, 0.0  ;;  %2670 = vmatprep.subr.bf16.mxu0 %v2838_v8 }
 0x6f3   : > { %1146 = vadd.xlane.f32.xlu1 %v1145_v52  ;;  %v2649_v53 = vpop.f32.mrf.mxu1 }
 0x77c   : > { %v1147_v54 = vpop.xlane.xlu1 %1146 }
 0x77d   : > { %v1148_v55 = vmul.f32 0.03125, %v1147_v54  ;;  %v2482_v54 = vld [vmem:[%s3262_s2 + $0xb] ss:$0 sm:$0xff] }
 0x77f   : > { %v1149_v56 = vsub.f32 %v1144_v50, %v1148_v55  ;;  %v2477_v50 = vld [vmem:[%s3262_s2 + $0xa] ss:$0 sm:$0xff] }
 0x781   : > { %v1150_v57 = vmul.f32 %v1149_v56, %v1149_v56 }
 0x783   : > { %v1151_v58 = vsel %vm292_vm0, %v1150_v57, 0.0 }
 0x784   : > { %1152 = vadd.xlane.f32.xlu0 %v1151_v58 }
 0x80d   : > { %v1153_v60 = vpop.xlane.xlu0 %1152 }
 0x80e   : > { %v1154_v61 = vmul.f32 0.03125, %v1153_v60 }
 0x810   : > { %v1155_v62 = vadd.f32 1e-12, %v1154_v61 }
 0x812   : > { %2802 = vrsqrt.f32 %v1155_v62 }
 0x81f   : > { %v2803_v63 = vpop.eup %2802 }
 0x820   : > { %v1157_v1 = vmul.f32 %v2803_v63, %v1149_v56 }
 0x822   : > { %v1162_v3 = vmul.f32 %v2464_v0, %v1157_v1 }
 0x824   : > { %v1167_v4 = vadd.f32 %v2465_v2, %v1162_v3 }
 0x826   : > { %v1168_v5 = vpack.c.bf16 %v1167_v4, %v1167_v4 }
 0x828   : > { %2655 = vmatmul.mubr.msk.bf16.vlgmr.msra.gmra.mxu0 %vm292_vm0, %v1168_v5 }
 0x829   : > { %2674 = vmatprep.mubr.msk.bf16.mxu0 %vm2839_vm1, %v2838_v8  ;;  %2671 = vmatpush3.bf16.msra.mxu0 %v2774_v42 }
 0x82a   : > { %2672 = vmatprep.subr.bf16.mxu0 %v2838_v8 }
 0x82d   : > { %2673 = vmatpush3.bf16.msra.mxu0 %v2775_v43 }
 0x82e   : > { %2678 = vmatprep.subr.mxu0 %v2838_v8 }
 0x8e8   : > { %v1226_v12 = vpop.f32.mrf.mxu0 }
 0x8e9   : > { %v1227_v13 = vadd.f32 %v2466_v11, %v1226_v12 }
 0x8ea   : > { %v2656_v14 = vpop.f32.mrf.mxu0 }
 0x8eb   : > { %v1233_v15 = vmul.f32 0.044715, %v1227_v13  ;;  %v1232_v24 = vmul.f32 0.5, %v1227_v13 }
 0x8ec   : > { %v1229_v16 = vpop.f32.mrf.mxu0 }
 0x8ed   : > { %v1234_v17 = vmul.f32 %v1233_v15, %v1227_v13 }
 0x8ee   : > { %v2657_v19 = vpop.f32.mrf.mxu0 }
 0x8ef   : > { %v1235_v20 = vmul.f32 %v1234_v17, %v1227_v13 }
 0x8f1   : > { %v1236_v21 = vadd.f32 %v1235_v20, %v1227_v13 }
 0x8f3   : > { %v1237_v22 = vmul.f32 0.7978846, %v1236_v21 }
 0x8f5   : > { %2804 = vtanh.f32 %v1237_v22 }
 0x902   : > { %v2805_v23 = vpop.eup %2804 }
 0x903   : > { %v1239_v25 = vadd.f32 1.0, %v2805_v23 }
 0x905   : > { %v1240_v26 = vmul.f32 %v1239_v25, %v1232_v24 }
 0x907   : > { %v1241_v27 = vpack.c.bf16 %v1240_v26, %v1240_v26 }
 0x909   : > { %2667 = vmatmul.mubr.msk.bf16.vlgmr.msra.gmra.mxu1 %vm1278_vm5, %v1241_v27 }
 0x90a   : > { %2690 = vmatprep.mubr.msk.f32.mxu1 %vm2839_vm1, %v2838_v8 }
 0x9c9   : > { %v1316_v29 = vpop.f32.mrf.mxu1 }
 0x9ca   : > { %v1317_v30 = vadd.f32 %v2470_v28, %v1316_v29 }
 0x9cb   : > { %v2668_v31 = vpop.f32.mrf.mxu1 }
 0x9cc   : > { %v1322_v32 = vadd.f32 %v1317_v30, %v1167_v4 }
 0x9cd   : > { %v1319_v34 = vpop.f32.mrf.mxu1 }
 0x9ce   : > { %v1323_v35 = vsel %vm292_vm0, %v1322_v32, 0.0 }
 0x9cf   : > { %1324 = vadd.xlane.f32.xlu0 %v1323_v35  ;;  %v2669_v36 = vpop.f32.mrf.mxu1 }
 0xa58   : > { %v1325_v37 = vpop.xlane.xlu0 %1324 }
 0xa59   : > { %v1326_v38 = vmul.f32 0.03125, %v1325_v37 }
 0xa5b   : > { %v1327_v39 = vsub.f32 %v1322_v32, %v1326_v38 }
 0xa5d   : > { %v1328_v40 = vmul.f32 %v1327_v39, %v1327_v39 }
 0xa5f   : > { %v1329_v41 = vsel %vm292_vm0, %v1328_v40, 0.0 }
 0xa60   : > { %1330 = vadd.xlane.f32.xlu1 %v1329_v41 }
 0xae9   : > { %v1331_v44 = vpop.xlane.xlu1 %1330 }
 0xaea   : > { %v1332_v45 = vmul.f32 0.03125, %v1331_v44 }
 0xaec   : > { %v1333_v46 = vadd.f32 1e-12, %v1332_v45 }
 0xaee   : > { %2806 = vrsqrt.f32 %v1333_v46 }
 0xafb   : > { %v2807_v47 = vpop.eup %2806 }
 0xafc   : > { %v1335_v49 = vmul.f32 %v2807_v47, %v1327_v39 }
 0xafe   : > { %v1340_v51 = vmul.f32 %v2476_v48, %v1335_v49 }
 0xb00   : > { %v3098_v52 = vadd.f32 %v2477_v50, %v1340_v51 }
 0xb02   : > { %v1354_v53 = vpack.c.bf16 %v3098_v52, %v3098_v52 }
 0xb04   : > { %2675 = vmatmul.mubr.msk.bf16.vlgmr.msra.gmra.mxu0 %vm292_vm0, %v1354_v53 }
 0xb05   : > { %2680 = vmatprep.mubr.msk.f32.mxu0 %vm2839_vm1, %v2838_v8 }
 0xbc4   : > { %v1413_v55 = vpop.f32.mrf.mxu0 }
 0xbc5   : > { %v1414_v56 = vadd.f32 %v2482_v54, %v1413_v55 }
 0xbc6   : > { %v2676_v57 = vpop.f32.mrf.mxu0 }
 0xbc7   : > { %1422 = vrot.lane.b32.xlu1 %v1414_v56, %s2842_s19  ;;  %1420 = vrot.lane.b32.xlu0 %v1414_v56, %s2841_s18 }
 0xbc8   : > { %v1416_v58 = vpop.f32.mrf.mxu0 }
 0xbca   : > { %v2677_v59 = vpop.f32.mrf.mxu0 }
 0xbcb   : > { %1424 = vrot.lane.b32.xlu1 %v1414_v56, %s2840_s17  ;;  %1426 = vrot.lane.b32.xlu0 %v1414_v56, %s2843_s20 }
 0xc39   : > { %v3112_v18 = vpop.permute.xlu1 %1422  ;;  %v3114_v60 = vpop.permute.xlu0 %1420 }
 0xc3a   : > { %1578 = vrot.lane.b32.xlu0 %v3112_v18, %s2843_s20  ;;  %1502 = vrot.lane.b32.xlu1 %v3114_v60, %s2843_s20 }
 0xc3d   : > { %v3120_v61 = vpop.permute.xlu1 %1424  ;;  %v1427_v62 = vpop.permute.xlu0 %1426 }
 0xc3e   : > { %1654 = vrot.lane.b32.xlu1 %v3120_v61, %s2843_s20  ;;  %2679 = vmatpush3.xpose.msk.msra.mxu0 %vm398_vm2, %v1427_v62  ;;  %v2776_v62 = vld [vmem:[%s3264_s4 + $0x18] sm:$0xff]  }
 0xc3f   : > { %2683 = vmatprep.subr.mxu0 %v2838_v8 }
 0xc41   : > { %2681 = vmatmul.mubr.msk.f32.vlgmr.msra.gmra.mxu0 %vm398_vm2, %v1414_v56 }
 0xc42   : > { %2685 = vmatprep.mubr.msk.f32.mxu0 %vm2839_vm1, %v2838_v8 }
 0xcac   : > { %v1503_v63 = vpop.permute.xlu1 %1502  ;;  %v1579_v0 = vpop.permute.xlu0 %1578 }
 0xcad   : > { %2684 = vmatpush3.xpose.msk.msra.mxu0 %vm398_vm2, %v1503_v63  ;;  %2689 = vmatpush3.xpose.msk.msra.mxu1 %vm398_vm2, %v1579_v0  ;;  %v2777_v63 = vld [vmem:[%s3264_s4 + $0x10] sm:$0xff]  }
 0xcae   : > { %2693 = vmatprep.subr.mxu0 %v2838_v8  ;;  %2698 = vmatprep.subr.mxu1 %v2838_v8 }
 0xcb0   : > { %v1655_v1 = vpop.permute.xlu1 %1654  ;;  %2686 = vmatmul.mubr.msk.f32.vlgmr.msra.gmra.mxu0 %vm398_vm2, %v3114_v60  ;;  %2691 = vmatmul.mubr.msk.f32.vlgmr.msra.gmra.mxu1 %vm398_vm2, %v3112_v18 }
 0xcb1   : > { %2694 = vmatpush3.xpose.msk.msra.mxu0 %vm398_vm2, %v1655_v1  ;;  %2695 = vmatprep.mubr.msk.f32.mxu0 %vm2839_vm1, %v2838_v8 }
 0xcb2   : > { %2700 = vmatprep.mubr.msk.f32.mxu1 %vm2839_vm1, %v2838_v8  ;;  %2703 = vmatprep.subr.mxu0 %v2838_v8 }
 0xcb4   : > { %2696 = vmatmul.mubr.msk.f32.vlgmr.msra.gmra.mxu0 %vm398_vm2, %v3120_v61 }
 0xcb5   : > { %2705 = vmatprep.mubr.msk.f32.mxu0 %vm2839_vm1, %v2838_v8 }
 0xd01   : > { %v1498_v2 = vpop.f32.mrf.mxu0 }
 0xd02   : > { %v1730_v3 = vmul.f32 0.35355338, %v1498_v2 }
 0xd03   : > { %v2682_v4 = vpop.f32.mrf.mxu0 }
 0xd04   : > { %v1734_v5 = vadd.f32 %v2980_v33, %v1730_v3 }
 0xd06   : > { %v1738_v6 = vsel %vm398_vm2, %v1734_v5, -inf }
 0xd07   : > { %1739 = vmax.xlane.f32.xlu0 %v1738_v6 }
 0xd70   : > { %v1574_v7 = vpop.f32.mrf.mxu0  ;;  %v1650_v9 = vpop.f32.mrf.mxu1 }
 0xd71   : > { %v1731_v10 = vmul.f32 0.35355338, %v1574_v7  ;;  %v1732_v11 = vmul.f32 0.35355338, %v1650_v9 }
 0xd72   : > { %v2687_v12 = vpop.f32.mrf.mxu0  ;;  %v2692_v13 = vpop.f32.mrf.mxu1 }
 0xd73   : > { %v1736_v14 = vadd.f32 %v2980_v33, %v1732_v11  ;;  %v1735_v15 = vadd.f32 %v2980_v33, %v1731_v10 }
 0xd74   : > { %v1726_v16 = vpop.f32.mrf.mxu0 }
 0xd75   : > { %v1733_v17 = vmul.f32 0.35355338, %v1726_v16  ;;  %v1744_v19 = vsel %vm398_vm2, %v1736_v14, -inf  ;;  %v1741_v20 = vsel %vm398_vm2, %v1735_v15, -inf }
 0xd76   : > { %1745 = vmax.xlane.f32.xlu0 %v1744_v19  ;;  %1742 = vmax.xlane.f32.xlu1 %v1741_v20  ;;  %v2697_v21 = vpop.f32.mrf.mxu0 }
 0xd77   : > { %v1737_v22 = vadd.f32 %v2980_v33, %v1733_v17 }
 0xd79   : > { %v1747_v23 = vsel %vm398_vm2, %v1737_v22, -inf }
 0xd7a   : > { %1748 = vmax.xlane.f32.xlu0 %v1747_v23 }
 0xd87   : > { %1782 = vrot.lane.b32.xlu1 %v1414_v56, %s2844_s26 }
 0xd90   : > { %v1740_v24 = vpop.xlane.xlu0 %1739 }
 0xd91   : > { %v1750_v25 = vsub.f32 %v1734_v5, %v1740_v24 }
 0xd93   : > { %v1754_v26 = vmul.f32 1.442695, %v1750_v25 }
 0xd95   : > { %2808 = vpow2.f32 %v1754_v26 }
 0xda2   : > { %v2809_v27 = vpop.eup %2808 }
 0xda3   : > { %v1762_v28 = vsel %vm398_vm2, %v2809_v27, 0.0 }
 0xdab   : > { %1763 = vadd.xlane.f32.xlu1 %v1762_v28  ;;  %v2778_v28 = vld [vmem:[%s3265_s5 + $0x18] sm:$0xff]  }
 0xdff   : > { %v1746_v29 = vpop.xlane.xlu0 %1745  ;;  %v1743_v30 = vpop.xlane.xlu1 %1742 }
 0xe00   : > { %v1752_v31 = vsub.f32 %v1736_v14, %v1746_v29  ;;  %v1751_v32 = vsub.f32 %v1735_v15, %v1743_v30  ;;  %v2502_v14 = vld [vmem:[%s3262_s2 + $0xd] ss:$0 sm:$0xff] }
 0xe02   : > { %v1758_v34 = vmul.f32 1.442695, %v1752_v31  ;;  %v1756_v35 = vmul.f32 1.442695, %v1751_v32 }
 0xe03   : > { %v1783_v33 = vpop.permute.xlu1 %1782  ;;  %v1749_v36 = vpop.xlane.xlu0 %1748 }
 0xe04   : > { %2810 = vpow2.f32 %v1758_v34  ;;  %v1753_v37 = vsub.f32 %v1737_v22, %v1749_v36  ;;  %2699 = vmatpush3.msra.mxu1 %v1783_v33  ;;  %v2506_v34 = vld [vmem:[%s3262_s2 + $0xe] ss:$0 sm:$0xff]  ;;  %v2507_v33 = vld [vmem:[%s3262_s2 + $0xf] ss:$0 sm:$0xff] }
 0xe05   : > { %2812 = vpow2.f32 %v1756_v35  ;;  %2708 = vmatprep.subr.mxu1 %v2838_v8 }
 0xe06   : > { %v1760_v38 = vmul.f32 1.442695, %v1753_v37 }
 0xe08   : > { %2814 = vpow2.f32 %v1760_v38 }
 0xe11   : > { %v2811_v39 = vpop.eup %2810 }
 0xe12   : > { %v2813_v40 = vpop.eup %2812  ;;  %v1768_v41 = vsel %vm398_vm2, %v2811_v39, 0.0 }
 0xe13   : > { %1769 = vadd.xlane.f32.xlu1 %v1768_v41  ;;  %v1765_v42 = vsel %vm398_vm2, %v2813_v40, 0.0  ;;  %v2782_v41 = vld [vmem:[%s3266_s6 + $0x28] sm:$0xff]  }
 0xe14   : > { %1766 = vadd.xlane.f32.xlu0 %v1765_v42  ;;  %v2783_v42 = vld [vmem:[%s3266_s6 + $0x20] sm:$0xff]  }
 0xe15   : > { %v2815_v43 = vpop.eup %2814 }
 0xe16   : > { %v1771_v44 = vsel %vm398_vm2, %v2815_v43, 0.0 }
 0xe18   : > { %1772 = vadd.xlane.f32.xlu0 %v1771_v44 }
 0xe24   : > { %1934 = vrot.lane.b32.xlu1 %v3112_v18, %s2844_s26 }
 0xe28   : > { %2010 = vrot.lane.b32.xlu1 %v3120_v61, %s2844_s26 }
 0xe2e   : > { %1858 = vrot.lane.b32.xlu0 %v3114_v60, %s2844_s26 }
 0xe34   : > { %v1764_v45 = vpop.xlane.xlu1 %1763 }
 0xe35   : > { %2816 = vrcp.f32 %v1764_v45 }
 0xe42   : > { %v2817_v46 = vpop.eup %2816 }
 0xe43   : > { %v1775_v47 = vmul.f32 %v2817_v46, %v2809_v27 }
 0xe45   : > { %2701 = vmatmul.mubr.msk.f32.vlgmr.msra.gmra.mxu1 %vm398_vm2, %v1775_v47 }
 0xe46   : > { %2710 = vmatprep.mubr.msk.f32.mxu1 %vm2839_vm1, %v2838_v8 }
 0xe9c   : > { %v1770_v48 = vpop.xlane.xlu1 %1769 }
 0xe9d   : > { %2818 = vrcp.f32 %v1770_v48  ;;  %v1767_v49 = vpop.xlane.xlu0 %1766 }
 0xe9e   : > { %2820 = vrcp.f32 %v1767_v49 }
 0xea0   : > { %v1935_v50 = vpop.permute.xlu1 %1934 }
 0xea1   : > { %v1773_v51 = vpop.xlane.xlu0 %1772  ;;  %2709 = vmatpush3.msra.mxu1 %v1935_v50 }
 0xea2   : > { %2822 = vrcp.f32 %v1773_v51  ;;  %2718 = vmatprep.subr.bf16.mxu1 %v2838_v8 }
 0xea4   : > { %v2011_v58 = vpop.permute.xlu1 %2010 }
 0xea5   : > { %v1859_v53 = vpop.permute.xlu0 %1858 }
 0xea6   : > { %2704 = vmatpush3.msra.mxu0 %v1859_v53 }
 0xea7   : > { %2713 = vmatprep.subr.mxu0 %v2838_v8 }
 0xeaa   : > { %v2819_v54 = vpop.eup %2818 }
 0xeab   : > { %v2821_v55 = vpop.eup %2820  ;;  %v1779_v56 = vmul.f32 %v2819_v54, %v2811_v39  ;;  %v2780_v39 = vld [vmem:[%s3266_s6 + $0x38] sm:$0xff]  }
 0xeac   : > { %v1777_v57 = vmul.f32 %v2821_v55, %v2813_v40  ;;  %v2781_v40 = vld [vmem:[%s3266_s6 + $0x30] sm:$0xff]  }
 0xead   : > { %2711 = vmatmul.mubr.msk.f32.vlgmr.msra.gmra.mxu1 %vm398_vm2, %v1779_v56 }
 0xeae   : > { %2706 = vmatmul.mubr.msk.f32.vlgmr.msra.gmra.mxu0 %vm398_vm2, %v1777_v57  ;;  %2722 = vmatprep.mubr.msk.bf16.mxu1 %vm2839_vm1, %v2838_v8 }
 0xeaf   : > { %v2823_v59 = vpop.eup %2822  ;;  %2714 = vmatpush3.msra.mxu0 %v2011_v58  ;;  %2715 = vmatprep.mubr.msk.f32.mxu0 %vm2839_vm1, %v2838_v8 }
 0xeb0   : > { %v1781_v18 = vmul.f32 %v2823_v59, %v2815_v43  ;;  %2726 = vmatprep.subr.bf16.mxu0 %v2838_v8  ;;  %2719 = vmatpush3.bf16.msra.mxu1 %v2776_v62  ;;  %v2512_v43 = vld [vmem:[%s3262_s2 + $0xc] ss:$0 sm:$0xff] }
 0xeb1   : > { %2720 = vmatprep.subr.bf16.mxu1 %v2838_v8 }
 0xeb2   : > { %2716 = vmatmul.mubr.msk.f32.vlgmr.msra.gmra.mxu0 %vm398_vm2, %v1781_v18  ;;  %v2524_v18 = vld [vmem:[%s3262_s2 + $0x10] ss:$0 sm:$0xff] }
 0xeb3   : > { %2730 = vmatprep.mubr.msk.bf16.mxu0 %vm2839_vm1, %v2838_v8  ;;  %2727 = vmatpush3.bf16.msra.mxu0 %v2778_v28 }
 0xeb4   : > { %2721 = vmatpush3.bf16.msra.mxu1 %v2777_v63  ;;  %2728 = vmatprep.subr.bf16.mxu0 %v2838_v8 }
 0xeb5   : > { %2734 = vmatprep.subr.bf16.mxu1 %v2838_v8 }
 0xf05   : > { %v1854_v60 = vpop.f32.mrf.mxu1 }
 0xf07   : > { %v2702_v61 = vpop.f32.mrf.mxu1 }
 0xf6d   : > { %v2006_v0 = vpop.f32.mrf.mxu1 }
 0xf6e   : > { %v1930_v1 = vpop.f32.mrf.mxu0  ;;  %2091 = vrot.lane.b32.xlu1 %v2006_v0, %s2846_s9 }
 0xf6f   : > { %2087 = vrot.lane.b32.xlu0 %v1930_v1, %s2845_s8  ;;  %v2712_v2 = vpop.f32.mrf.mxu1 }
 0xf70   : > { %v2707_v3 = vpop.f32.mrf.mxu0 }
 0xf72   : > { %v2082_v4 = vpop.f32.mrf.mxu0 }
 0xf73   : > { %2095 = vrot.lane.b32.xlu0 %v2082_v4, %s2847_s10  ;;  %s285_s10 = scalar_lea.vmem %s3267_s7, %s3269_s25 }
 0xf74   : > { %v2717_v5 = vpop.f32.mrf.mxu0  ;;  %2375 = vst [vmem:[%s285_s10] sm:$0x1] %v2838_v8 }
 0xfe0   : > { %v2092_v7 = vpop.permute.xlu1 %2091 }
 0xfe1   : > { %v2088_v6 = vpop.permute.xlu0 %2087 }
 0xfe2   : > { %v2098_v9 = vsel %vm398_vm2, %v1854_v60, %v2088_v6 }
 0xfe3   : > { %v2099_v10 = vsel %vm1076_vm3, %v2098_v9, %v2092_v7 }
 0xfe5   : > { %v2096_v11 = vpop.permute.xlu0 %2095 }
 0xfe6   : > { %v2100_v12 = vsel %vm1078_vm4, %v2099_v10, %v2096_v11 }
 0xfe7   : > { %v2101_v13 = vpack.c.bf16 %v2100_v12, %v2100_v12 }
 0xfe9   : > { %2723 = vmatmul.mubr.msk.bf16.vlgmr.msra.gmra.mxu1 %vm292_vm0, %v2101_v13  ;;  %v2530_v13 = vld [vmem:[%s3262_s2 + $0x11] ss:$0 sm:$0xff] }
 0xfea   : > { %2742 = vmatprep.mubr.msk.bf16.mxu1 %vm2839_vm1, %v2838_v8  ;;  %2735 = vmatpush3.bf16.msra.mxu1 %v2780_v39 }
 0xfeb   : > { %2736 = vmatprep.subr.bf16.mxu1 %v2838_v8 }
 0xfee   : > { %2737 = vmatpush3.bf16.msra.mxu1 %v2781_v40 }
 0xfef   : > { %2738 = vmatprep.subr.bf16.mxu1 %v2838_v8 }
 0xff2   : > { %2739 = vmatpush3.bf16.msra.mxu1 %v2782_v41 }
 0xff3   : > { %2740 = vmatprep.subr.bf16.mxu1 %v2838_v8 }
 0xff6   : > { %2741 = vmatpush3.bf16.msra.mxu1 %v2783_v42 }
0x10a9   : > { %v2160_v15 = vpop.f32.mrf.mxu1 }
0x10aa   : > { %v2161_v16 = vadd.f32 %v2502_v14, %v2160_v15  ;;  %v2531_v15 = vld [vmem:[%s3262_s2 + $0x12] ss:$0 sm:$0xff] }
0x10ab   : > { %v2724_v17 = vpop.f32.mrf.mxu1 }
0x10ac   : > { %v2166_v19 = vadd.f32 %v2161_v16, %v3098_v52  ;;  %v2779_v52 = vld [vmem:[%s3265_s5 + $0x10] sm:$0xff]   ;;  %v289_v17 = vld [vmem:[%s3262_s2 + $0x2] sm:$0x1] }
0x10ad   : > { %v2163_v20 = vpop.f32.mrf.mxu1  ;;  %2729 = vmatpush3.bf16.msra.mxu0 %v2779_v52 }
0x10ae   : > { %v2167_v21 = vsel %vm292_vm0, %v2166_v19, 0.0 }
0x10af   : > { %2168 = vadd.xlane.f32.xlu1 %v2167_v21  ;;  %v2725_v22 = vpop.f32.mrf.mxu1 }
0x1138   : > { %v2169_v23 = vpop.xlane.xlu1 %2168 }
0x1139   : > { %v2170_v24 = vmul.f32 0.03125, %v2169_v23 }
0x113b   : > { %v2171_v25 = vsub.f32 %v2166_v19, %v2170_v24 }
0x113d   : > { %v2172_v26 = vmul.f32 %v2171_v25, %v2171_v25 }
0x113f   : > { %v2173_v27 = vsel %vm292_vm0, %v2172_v26, 0.0 }
0x1140   : > { %2174 = vadd.xlane.f32.xlu0 %v2173_v27 }
0x11c9   : > { %v2175_v29 = vpop.xlane.xlu0 %2174 }
0x11ca   : > { %v2176_v30 = vmul.f32 0.03125, %v2175_v29 }
0x11cc   : > { %v2177_v31 = vadd.f32 1e-12, %v2176_v30 }
0x11ce   : > { %2824 = vrsqrt.f32 %v2177_v31 }
0x11db   : > { %v2825_v32 = vpop.eup %2824 }
0x11dc   : > { %v2179_v35 = vmul.f32 %v2825_v32, %v2171_v25 }
0x11de   : > { %v2184_v36 = vmul.f32 %v2506_v34, %v2179_v35 }
0x11e0   : > { %v2189_v37 = vadd.f32 %v2507_v33, %v2184_v36 }
0x11e2   : > { %v2190_v38 = vpack.c.bf16 %v2189_v37, %v2189_v37 }
0x11e4   : > { %2731 = vmatmul.mubr.msk.bf16.vlgmr.msra.gmra.mxu0 %vm292_vm0, %v2190_v38 }
0x12a4   : > { %v2249_v44 = vpop.f32.mrf.mxu0 }
0x12a5   : > { %v2250_v45 = vadd.f32 %v2512_v43, %v2249_v44 }
0x12a6   : > { %v2732_v46 = vpop.f32.mrf.mxu0 }
0x12a7   : > { %v2256_v47 = vmul.f32 0.044715, %v2250_v45  ;;  %v2255_v56 = vmul.f32 0.5, %v2250_v45 }
0x12a8   : > { %v2252_v48 = vpop.f32.mrf.mxu0 }
0x12a9   : > { %v2257_v49 = vmul.f32 %v2256_v47, %v2250_v45 }
0x12aa   : > { %v2733_v50 = vpop.f32.mrf.mxu0 }
0x12ab   : > { %v2258_v51 = vmul.f32 %v2257_v49, %v2250_v45 }
0x12ad   : > { %v2259_v53 = vadd.f32 %v2258_v51, %v2250_v45 }
0x12af   : > { %v2260_v54 = vmul.f32 0.7978846, %v2259_v53 }
0x12b1   : > { %2826 = vtanh.f32 %v2260_v54 }
0x12be   : > { %v2827_v55 = vpop.eup %2826 }
0x12bf   : > { %v2262_v57 = vadd.f32 1.0, %v2827_v55 }
0x12c1   : > { %v2263_v58 = vmul.f32 %v2262_v57, %v2255_v56 }
0x12c3   : > { %v2264_v59 = vpack.c.bf16 %v2263_v58, %v2263_v58 }
0x12c5   : > { %2743 = vmatmul.mubr.msk.bf16.vlgmr.msra.gmra.mxu1 %vm1278_vm5, %v2264_v59 }
0x1385   : > { %v2339_v60 = vpop.f32.mrf.mxu1 }
0x1386   : > { %v2340_v61 = vadd.f32 %v2524_v18, %v2339_v60 }
0x1387   : > { %v2744_v62 = vpop.f32.mrf.mxu1 }
0x1388   : > { %v2345_v63 = vadd.f32 %v2340_v61, %v2189_v37 }
0x1389   : > { %v2342_v0 = vpop.f32.mrf.mxu1 }
0x138a   : > { %v2346_v1 = vsel %vm292_vm0, %v2345_v63, 0.0 }
0x138b   : > { %2347 = vadd.xlane.f32.xlu0 %v2346_v1  ;;  %v2745_v2 = vpop.f32.mrf.mxu1 }
0x1414   : > { %v2348_v3 = vpop.xlane.xlu0 %2347 }
0x1415   : > { %v2349_v4 = vmul.f32 0.03125, %v2348_v3 }
0x1417   : > { %v2350_v5 = vsub.f32 %v2345_v63, %v2349_v4 }
0x1419   : > { %v2351_v6 = vmul.f32 %v2350_v5, %v2350_v5 }
0x141b   : > { %v2352_v7 = vsel %vm292_vm0, %v2351_v6, 0.0 }
0x141c   : > { %2353 = vadd.xlane.f32.xlu1 %v2352_v7 }
0x14a5   : > { %v2354_v9 = vpop.xlane.xlu1 %2353 }
0x14a6   : > { %v2355_v10 = vmul.f32 0.03125, %v2354_v9 }
0x14a8   : > { %v2356_v11 = vadd.f32 1e-12, %v2355_v10 }
0x14aa   : > { %2828 = vrsqrt.f32 %v2356_v11 }
0x14b7   : > { %v2829_v12 = vpop.eup %2828 }
0x14b8   : > { %v2358_v14 = vmul.f32 %v2829_v12, %v2350_v5 }
0x14ba   : > { %v2363_v16 = vmul.f32 %v2530_v13, %v2358_v14 }
0x14bc   : > { %v2368_v8 = vadd.f32 %v2531_v15, %v2363_v16 }
0x14be   : > { %v2369_v19 = vsub.f32 %v2368_v8, %v289_v17  ;;  %2376 = vst.msk [vmem:[%s285_s10] sm:$0x1] %vm2371_vm6, %v2368_v8 }
0x14c0   : > { %v2370_v20 = vmul.f32 %v2369_v19, %v2369_v19 }
0x14c2   : > { %v2372_v21 = vsel %vm2371_vm6, %v2370_v20, 0.0 }
0x14c3   : > { %2373 = vadd.xlane.f32.xlu0 %v2372_v21 }
0x154c   : > { %v2374_v22 = vpop.xlane.xlu0 %2373 }
0x154d   : > { %2378 = vst.msk [vmem:[%s285_s10] sm:$0x1] %vm2377_vm7, %v2374_v22 }
0x154e PF: > { %s17_s24 = sadd.s32 1, %s2836_s24  }
0x154f   : > { %p14_p4 = scmp.ge.s32.totalorder %s17_s24, 4  }
0x1551   :  { %16 = sbr.rel (!%p14_p4) target bundleno = 1 (0x1), region = 85 }

</bundles_post_ra>
